<compile_context>
chip_gen: v7x
topology: tpu7x:2x2x1
jax: 0.10.0
libtpu: 0.0.40
codegen_flags: <defaults>
</compile_context>

<pallas_src>
import functools
import math

import jax
import jax.numpy as jnp
from jax.experimental import pallas as pl
from jax.experimental.pallas import tpu as pltpu

BN_EPS = 1e-5
BN_SCALE = 1.0 / math.sqrt(1.0 + BN_EPS)

LANE = 128                       # TPU lane width: output channel dims pad to this
TM_TARGET = 512
TILE_BUDGET = 16 * 1024 * 1024   # per-call double-buffered tile budget (all gens)


def _round_up(v, m):
    return ((v + m - 1) // m) * m


def _pad_lane(c):
    return max(LANE, _round_up(c, LANE))


def _pick_tm(M8, target=TM_TARGET):
    """Largest tm <= target (multiple of 8) with minimal last-tile waste."""
    if M8 <= target:
        return M8
    best_t, best_waste = target, (-M8) % target
    for t in range(target, target // 2 - 1, -8):
        waste = (-M8) % t
        if waste == 0:
            return t
        if waste < best_waste:
            best_t, best_waste = t, waste
    return best_t


def _pick_tk(K, tm, tn, out_item):
    """Prefer tk == K (nk == 1 fast path) whenever the tiles fit the budget."""
    def foot(tk):
        return 2 * (tm * tk * 2 + tk * tn * 2 + tm * tn * out_item) + tm * tn * 4
    if K % LANE != 0 or foot(K) <= TILE_BUDGET:
        return K
    for t in range(K - LANE, LANE - 1, -LANE):
        if K % t == 0 and foot(t) <= TILE_BUDGET:
            return t
    return LANE


# --------------------------- fused matmul kernel ----------------------------

def _fused_mm_kernel(x_ref, w_ref, *rest, act, nk, has_scale, has_bias, has_res):
    idx = 0
    scale_ref = rest[idx] if has_scale else None
    idx += int(has_scale)
    bias_ref = rest[idx] if has_bias else None
    idx += int(has_bias)
    res_ref = rest[idx] if has_res else None
    idx += int(has_res)
    o_ref = rest[idx]

    def _partial(xb):
        if has_scale:
            xb = xb * scale_ref[0]                 # (1, tk) broadcast over rows
        return jnp.dot(xb, w_ref[...], preferred_element_type=jnp.float32)

    def _epilogue(y):
        if has_bias:
            y = y + bias_ref[0].astype(jnp.float32)
        if has_res:
            y = y + res_ref[0].astype(jnp.float32)
        if act == "relu":
            y = jnp.maximum(y, 0.0)
        elif act == "sigmoid":
            y = jax.nn.sigmoid(y)
        return y

    if nk == 1:
        # Fast path: no scratch accumulator, single dot + fused epilogue.
        o_ref[...] = _epilogue(_partial(x_ref[0]))[None].astype(o_ref.dtype)
    else:
        acc_ref = rest[idx + 1]
        k = pl.program_id(3)

        @pl.when(k == 0)
        def _():
            acc_ref[...] = jnp.zeros_like(acc_ref)

        acc_ref[...] += _partial(x_ref[0])

        @pl.when(k == nk - 1)
        def _():
            o_ref[...] = _epilogue(acc_ref[...])[None].astype(o_ref.dtype)


def fused_matmul(x, w, *, scale=None, bias=None, residual=None, act="none",
                 out_dtype=jnp.bfloat16):
    """y[b] = act((x[b] * scale[b]) @ w + bias + residual[b]).

    x: (B, M, K) bf16; w: (K, N) bf16, N % 128 == 0.
    scale: optional (B, 1, K); bias: optional (1, 1, N) f32;
    residual: optional (B, M, N).  Returns (B, M, N) out_dtype.
    """
    B, M, K = x.shape
    Kw, N = w.shape
    assert Kw == K and N % LANE == 0
    out_item = jnp.dtype(out_dtype).itemsize

    # Fold batch into M when there is no per-batch input scale.
    if scale is None and B > 1:
        x = x.reshape(1, B * M, K)
        if residual is not None:
            residual = residual.reshape(1, B * M, N)
        Bf, Mf = 1, B * M
    else:
        Bf, Mf = B, M

    M8 = max(8, _round_up(Mf, 8))
    tm = _pick_tm(M8)
    Mp = _round_up(M8, tm)
    tn = N if N <= 256 else (256 if N % 256 == 0 else LANE)
    tk = _pick_tk(K, tm, tn, out_item)
    nk = K // tk

    if Mp != Mf:
        x = jnp.pad(x, ((0, 0), (0, Mp - Mf), (0, 0)))
        if residual is not None:
            residual = jnp.pad(residual, ((0, 0), (0, Mp - Mf), (0, 0)))

    operands = [x, w]
    if nk == 1:
        grid = (Bf, Mp // tm, N // tn)
        in_specs = [pl.BlockSpec((1, tm, K), lambda b, i, j: (b, i, 0)),
                    pl.BlockSpec((K, tn), lambda b, i, j: (0, j))]
        if scale is not None:
            operands.append(scale)
            in_specs.append(pl.BlockSpec((1, 1, K), lambda b, i, j: (b, 0, 0)))
        if bias is not None:
            operands.append(bias)
            in_specs.append(pl.BlockSpec((1, 1, tn), lambda b, i, j: (0, 0, j)))
        if residual is not None:
            operands.append(residual)
            in_specs.append(pl.BlockSpec((1, tm, tn), lambda b, i, j: (b, i, j)))
        out_specs = pl.BlockSpec((1, tm, tn), lambda b, i, j: (b, i, j))
        scratch_shapes = ()
        dims = ("parallel", "parallel", "parallel")
    else:
        grid = (Bf, Mp // tm, N // tn, nk)
        in_specs = [pl.BlockSpec((1, tm, tk), lambda b, i, j, k: (b, i, k)),
                    pl.BlockSpec((tk, tn), lambda b, i, j, k: (k, j))]
        if scale is not None:
            operands.append(scale)
            in_specs.append(pl.BlockSpec((1, 1, tk), lambda b, i, j, k: (b, 0, k)))
        if bias is not None:
            operands.append(bias)
            in_specs.append(pl.BlockSpec((1, 1, tn), lambda b, i, j, k: (0, 0, j)))
        if residual is not None:
            operands.append(residual)
            in_specs.append(pl.BlockSpec((1, tm, tn), lambda b, i, j, k: (b, i, j)))
        out_specs = pl.BlockSpec((1, tm, tn), lambda b, i, j, k: (b, i, j))
        scratch_shapes = (pltpu.VMEM((tm, tn), jnp.float32),)
        dims = ("parallel", "parallel", "parallel", "arbitrary")

    # VMEM limit derived from the actual (double-buffered) tile footprint.
    foot = 2 * (tm * tk * x.dtype.itemsize + tk * tn * w.dtype.itemsize
                + tm * tn * out_item)
    if scale is not None:
        foot += 2 * tk * scale.dtype.itemsize
    if bias is not None:
        foot += 2 * tn * 4
    if residual is not None:
        foot += 2 * tm * tn * residual.dtype.itemsize
    if nk > 1:
        foot += tm * tn * 4
    vmem_limit = int(min(32 * 1024 * 1024, max(8 * 1024 * 1024, 3 * foot)))

    bytes_accessed = int(Bf * Mp * N * out_item
                         + sum(op.size * op.dtype.itemsize for op in operands))
    cost = pl.CostEstimate(
        flops=int(2 * Bf * Mp * K * N),
        transcendentals=int(Bf * Mp * N) if act == "sigmoid" else 0,
        bytes_accessed=bytes_accessed)

    kernel = functools.partial(
        _fused_mm_kernel, act=act, nk=nk,
        has_scale=scale is not None, has_bias=bias is not None,
        has_res=residual is not None)

    y = pl.pallas_call(
        kernel,
        out_shape=jax.ShapeDtypeStruct((Bf, Mp, N), out_dtype),
        grid=grid,
        in_specs=in_specs,
        out_specs=out_specs,
        scratch_shapes=scratch_shapes,
        compiler_params=pltpu.CompilerParams(
            dimension_semantics=dims, vmem_limit_bytes=vmem_limit),
        cost_estimate=cost,
    )(*operands)

    if Mp != Mf:
        y = y[:, :Mf, :]
    if Bf != B:
        y = y.reshape(B, M, N)
    return y


# --------------------------- global average pool ----------------------------

def _gap_kernel(x_ref, o_ref, *, nsteps, inv_hw):
    s = pl.program_id(1)

    @pl.when(s == 0)
    def _():
        o_ref[...] = jnp.zeros_like(o_ref)

    o_ref[...] += jnp.sum(x_ref[...].astype(jnp.float32), axis=1, keepdims=True)

    @pl.when(s == nsteps - 1)
    def _():
        o_ref[...] = o_ref[...] * inv_hw


def global_avg_pool(x):
    """x: (B, HW, C) -> (B, 1, C) f32  (AdaptiveAvgPool2d((1, 1)))."""
    B, HW, C = x.shape
    if HW % 8 == 0:
        cap = max(8, ((2 * 1024 * 1024) // (C * x.dtype.itemsize)) // 8 * 8)
        thw = min(HW, cap)
        while HW % thw:
            thw -= 8
    else:
        thw = HW
    nsteps = HW // thw
    vmem_limit = int(min(32 * 1024 * 1024,
                         max(8 * 1024 * 1024,
                             4 * thw * C * x.dtype.itemsize + 8 * C * 4)))
    return pl.pallas_call(
        functools.partial(_gap_kernel, nsteps=nsteps, inv_hw=1.0 / HW),
        out_shape=jax.ShapeDtypeStruct((B, 1, C), jnp.float32),
        grid=(B, nsteps),
        in_specs=[pl.BlockSpec((1, thw, C), lambda b, s: (b, s, 0))],
        out_specs=pl.BlockSpec((1, 1, C), lambda b, s: (b, 0, 0)),
        compiler_params=pltpu.CompilerParams(
            dimension_semantics=("parallel", "arbitrary"),
            vmem_limit_bytes=vmem_limit),
    )(x)


# ------------------------- fused SE excitation kernel -----------------------

def _se_excite_kernel(p_ref, w1_ref, b1_ref, w2_ref, b2_ref, o_ref):
    h = jnp.dot(p_ref[...], w1_ref[...], preferred_element_type=jnp.float32)
    h = jnp.maximum(h + b1_ref[...], 0.0)
    s = jnp.dot(h, w2_ref[...], preferred_element_type=jnp.float32) + b2_ref[...]
    o_ref[...] = jax.nn.sigmoid(s).astype(o_ref.dtype)


def se_excite(pooled, w1, b1, w2, b2):
    """sigmoid(relu(p @ w1 + b1) @ w2 + b2) — one launch, f32 math, bf16 gate."""
    B, C = pooled.shape
    return pl.pallas_call(
        _se_excite_kernel,
        out_shape=jax.ShapeDtypeStruct((B, C), jnp.bfloat16),
        compiler_params=pltpu.CompilerParams(
            vmem_limit_bytes=16 * 1024 * 1024),
    )(pooled, w1, b1, w2, b2)


# ------------------------------ conv via im2col -----------------------------

def conv2d(x, w, *, stride, pad, act="none", scale=None, residual=None,
           bias=None, out_dtype=jnp.bfloat16):
    """x: (B,H,W,C) NHWC bf16; w: (kh,kw,cin_real,cout_pad) bf16.

    The real input-channel count is taken from the weight; padded activation
    lanes beyond it are sliced away before the matmul (K stays unpadded).
    Optional fused epilogue: per-(batch, in-channel) `scale` (SE), `bias`,
    `residual` add and activation — all applied inside the matmul kernel.
    """
    B, H, W, C = x.shape
    kh, kw, cin, Cout = w.shape
    if C > cin:
        x = x[..., :cin]
    Ho = (H + 2 * pad - kh) // stride + 1
    Wo = (W + 2 * pad - kw) // stride + 1

    if kh == 1 and kw == 1 and pad == 0:
        if stride != 1:
            x = x[:, ::stride, ::stride, :]
        cols = x.reshape(B, Ho * Wo, cin)
        K = cin
    else:
        # TODO(synk): im2col still materializes kh*kw shifted copies in HBM; a
        # direct-conv kernel (tap-indexed BlockSpec for stride 1 / manual-DMA
        # windows for stride 2) would cut that activation traffic ~(kh*kw)x.
        xp = jnp.pad(x, ((0, 0), (pad, pad), (pad, pad), (0, 0)))
        taps = []
        for dy in range(kh):
            for dx in range(kw):
                taps.append(xp[:, dy:dy + (Ho - 1) * stride + 1:stride,
                               dx:dx + (Wo - 1) * stride + 1:stride, :])
        cols = jnp.concatenate(taps, axis=-1).reshape(B, Ho * Wo, kh * kw * cin)
        K = kh * kw * cin
        if scale is not None:
            scale = jnp.tile(scale, (1, 1, kh * kw))

    w2 = w.reshape(K, Cout)
    res2 = residual.reshape(B, Ho * Wo, Cout) if residual is not None else None
    y = fused_matmul(cols, w2, scale=scale, bias=bias, residual=res2,
                     act=act, out_dtype=out_dtype)
    return y.reshape(B, Ho, Wo, Cout)


# --------------------------- parameter construction -------------------------

def conv_init(key, kh, kw, cin, cout, cout_pad=None):
    cout_pad = cout if cout_pad is None else cout_pad
    std = math.sqrt(2.0 / (kh * kw * cout))
    w = jax.random.normal(key, (kh, kw, cin, cout), jnp.float32) * std
    return jnp.zeros((kh, kw, cin, cout_pad), jnp.float32).at[..., :cout].set(w)


def grouped_conv_init(key, kh, kw, cin, cout, groups, cout_pad):
    # NOTE(perf): grouped conv kept as a block-diagonal dense weight over the
    # REAL input channels.  For large RegNet widths (>=128 per group) a
    # per-group grid axis selecting (cin_g, cout_g) weight blocks would cut
    # MXU FLOPs / weight traffic by the group count.
    cin_g, cout_g = cin // groups, cout // groups
    std = math.sqrt(2.0 / (kh * kw * cout))
    wg = jax.random.normal(key, (groups, kh, kw, cin_g, cout_g), jnp.float32) * std
    dense = jnp.zeros((kh, kw, cin, cout_pad), jnp.float32)
    for g in range(groups):
        dense = dense.at[:, :, g * cin_g:(g + 1) * cin_g,
                         g * cout_g:(g + 1) * cout_g].set(wg[g])
    return dense


def build_anynet_params(key, *, stem_w, ds, ws, ss, bms, gws, se_r, nc, in_w=3):
    bms = bms if bms else [1.0 for _ in ds]
    gws = gws if gws else [1 for _ in ds]
    keys = iter(jax.random.split(key, 512))
    bf = jnp.bfloat16

    params = {"nc": nc,
              "stem": {"w": (conv_init(next(keys), 3, 3, in_w, stem_w,
                                       _pad_lane(stem_w)) * BN_SCALE).astype(bf)}}
    stages, prev_w = [], stem_w
    for d, w_out, s, bm, gw in zip(ds, ws, ss, bms, gws):
        blocks = []
        for i in range(d):
            b_stride = s if i == 0 else 1
            b_w_in = prev_w if i == 0 else w_out
            w_b = int(round(w_out * bm))
            num_gs = w_b // gw
            cout_p, wb_p = _pad_lane(w_out), _pad_lane(w_b)
            bp = {
                "stride": b_stride,
                "w_in": b_w_in, "w_b": w_b, "w_out": w_out,
                "has_proj": (b_w_in != w_out) or (b_stride != 1),
                "has_se": bool(se_r),
                "a_w": (conv_init(next(keys), 1, 1, b_w_in, w_b, wb_p)
                        * BN_SCALE).astype(bf),
                "b_w": (grouped_conv_init(next(keys), 3, 3, w_b, w_b, num_gs, wb_p)
                        * BN_SCALE).astype(bf),
                "c_w": (conv_init(next(keys), 1, 1, w_b, w_out, cout_p)
                        * BN_SCALE).astype(bf),
            }
            if bp["has_proj"]:
                bp["proj_w"] = (conv_init(next(keys), 1, 1, b_w_in, w_out, cout_p)
                                * BN_SCALE).astype(bf)
            if bp["has_se"]:
                w_se = int(round(b_w_in * se_r))
                wse_p = _pad_lane(w_se)
                se1 = conv_init(next(keys), 1, 1, w_b, w_se, wse_p).reshape(w_b, wse_p)
                se2 = conv_init(next(keys), 1, 1, w_se, w_b, wb_p).reshape(w_se, wb_p)
                bp["se1_w"] = jnp.zeros((wb_p, wse_p), jnp.float32).at[:w_b].set(se1)
                bp["se1_b"] = jnp.zeros((1, wse_p), jnp.float32)
                bp["se2_w"] = jnp.zeros((wse_p, wb_p), jnp.float32).at[:w_se].set(se2)
                bp["se2_b"] = jnp.zeros((1, wb_p), jnp.float32)
            blocks.append(bp)
        stages.append(blocks)
        prev_w = w_out
    params["stages"] = stages
    params["w_final"] = prev_w

    nc_p = _pad_lane(nc)
    fc = jax.random.normal(next(keys), (prev_w, nc), jnp.float32) * (1.0 / prev_w)
    fc_w = jnp.zeros((prev_w, nc_p), jnp.float32).at[:, :nc].set(fc)
    params["head"] = {"fc_w": fc_w.astype(bf),
                      "fc_b": jnp.zeros((1, 1, nc_p), jnp.float32)}
    return params


# --------------------------------- forward ----------------------------------

def block_forward(bp, x):
    """ResBottleneckBlock: relu(skip(x) + c(se(relu(b(relu(a(x))))))) — the
    residual add + final ReLU and the SE gate are fused into the c-conv."""
    stride = bp["stride"]
    if bp["has_proj"]:
        skip = conv2d(x, bp["proj_w"], stride=stride, pad=0, act="none")
    else:
        skip = x

    a = conv2d(x, bp["a_w"], stride=1, pad=0, act="relu")
    bt = conv2d(a, bp["b_w"], stride=stride, pad=1, act="relu")

    scale = None
    if bp["has_se"]:
        Bc, Hc, Wc, Cp = bt.shape
        pooled = global_avg_pool(bt.reshape(Bc, Hc * Wc, Cp))[:, 0, :]   # (B,Cp) f32
        gate = se_excite(pooled, bp["se1_w"], bp["se1_b"],
                         bp["se2_w"], bp["se2_b"])                       # (B,Cp) bf16
        scale = gate[:, None, :bp["w_b"]]                                # (B,1,w_b)

    # c-conv with fused SE input-scale, residual add and final ReLU.
    return conv2d(bt, bp["c_w"], stride=1, pad=0, act="relu",
                  scale=scale, residual=skip)


def anynet_forward(params, x_nchw):
    # NCHW (PyTorch convention) -> NHWC internally (channels on TPU lanes);
    # activations carried in bf16, output channels padded to 128 lanes.
    x = jnp.transpose(x_nchw, (0, 2, 3, 1)).astype(jnp.bfloat16)
    x = conv2d(x, params["stem"]["w"], stride=2, pad=1, act="relu")
    for blocks in params["stages"]:
        for bp in blocks:
            x = block_forward(bp, x)
    B, H, W, C = x.shape
    pooled = global_avg_pool(x.reshape(B, H * W, C))                     # (B,1,C) f32
    feat = pooled[:, :, :params["w_final"]].astype(jnp.bfloat16)         # (B,1,w_in)
    logits = fused_matmul(feat, params["head"]["fc_w"],
                          bias=params["head"]["fc_b"], act="none",
                          out_dtype=jnp.float32)                         # (B,1,nc_p)
    return logits[:, 0, :params["nc"]]


# ----------------------------------- main ------------------------------------

if __name__ == "__main__":
    key = jax.random.PRNGKey(0)
    k_param, k_input = jax.random.split(key)

    # Small AnyNet config: 2 stages, 1 block each, SE enabled.
    params = build_anynet_params(
        k_param,
        stem_w=8,
        ds=[1, 1],
        ws=[16, 32],
        ss=[2, 2],
        bms=[1.0, 1.0],
        gws=[8, 8],
        se_r=0.25,
        nc=10,
    )

    x = jax.random.normal(k_input, (2, 3, 16, 16), jnp.float32)  # NCHW
    forward = jax.jit(lambda xx: anynet_forward(params, xx))
    logits = jax.block_until_ready(forward(x))
    assert logits.shape == (2, 10) and logits.dtype == jnp.float32
    print("KERNEL_OK")
</pallas_src>

<mosaic_0001>
module attributes {stable_mosaic.version = 11 : i64} {
  func.func @_fused_mm_kernel(%arg0: i32, %arg1: i32, %arg2: i32, %arg3: memref<1x128x27xbf16, #tpu.memory_space<vmem>>, %arg4: memref<27x128xbf16, #tpu.memory_space<vmem>>, %arg5: memref<1x128x128xbf16, #tpu.memory_space<vmem>>) attributes {dimension_semantics = [#tpu.dimension_semantics<parallel>, #tpu.dimension_semantics<parallel>, #tpu.dimension_semantics<parallel>], iteration_bounds = array<i64: 1, 1, 1>, scalar_prefetch = 0 : i64, scratch_operands = 0 : i64, tpu.core_type = #tpu.core_type<tc>, window_params = [{transform_indices = @transform_0, window_bounds = array<i64: 1, 128, 27>}, {transform_indices = @transform_1, window_bounds = array<i64: 27, 128>}, {transform_indices = @transform_2, window_bounds = array<i64: 1, 128, 128>}]} {
    %c0 = arith.constant 0 : index
    %c0_0 = arith.constant 0 : index
    %c0_1 = arith.constant 0 : index
    %0 = vector.load %arg3[%c0, %c0_0, %c0_1] : memref<1x128x27xbf16, #tpu.memory_space<vmem>>, vector<1x128x27xbf16>
    %1 = vector.shape_cast %0 : vector<1x128x27xbf16> to vector<128x27xbf16>
    %c0_2 = arith.constant 0 : index
    %c0_3 = arith.constant 0 : index
    %2 = vector.load %arg4[%c0_2, %c0_3] : memref<27x128xbf16, #tpu.memory_space<vmem>>, vector<27x128xbf16>
    %cst = arith.constant dense<0.000000e+00> : vector<128x128xf32>
    %3 = tpu.matmul %1, %2, %cst {dimension_numbers = #tpu.dot_dimension_numbers<[1], [0], [0], [1], [0, 0, 1, 1], [], []>} : vector<128x27xbf16>, vector<27x128xbf16>, vector<128x128xf32> -> vector<128x128xf32>
    %cst_4 = arith.constant 0.000000e+00 : f32
    %4 = vector.broadcast %cst_4 : f32 to vector<128x128xf32>
    %5 = arith.maximumf %3, %4 : vector<128x128xf32>
    %6 = vector.shape_cast %5 : vector<128x128xf32> to vector<1x128x128xf32>
    %7 = arith.truncf %6 : vector<1x128x128xf32> to vector<1x128x128xbf16>
    %c0_5 = arith.constant 0 : index
    %c0_6 = arith.constant 0 : index
    %c0_7 = arith.constant 0 : index
    %8 = vector.load %arg5[%c0_5, %c0_6, %c0_7] : memref<1x128x128xbf16, #tpu.memory_space<vmem>>, vector<1x128x128xbf16>
    tpu.vector_store %arg5[%c0_5, %c0_6, %c0_7], %7 {strides = array<i32>} : memref<1x128x128xbf16, #tpu.memory_space<vmem>>, vector<1x128x128xbf16>,
    return
  }
  func.func @transform_0(%arg0: i32, %arg1: i32, %arg2: i32) -> (i32, i32, i32) {
    %c0_i32 = arith.constant 0 : i32
    %c0_i32_0 = arith.constant 0 : i32
    return %arg0, %arg1, %c0_i32 : i32, i32, i32
  }
  func.func @transform_1(%arg0: i32, %arg1: i32, %arg2: i32) -> (i32, i32) {
    %c0_i32 = arith.constant 0 : i32
    %c0_i32_0 = arith.constant 0 : i32
    return %c0_i32, %arg2 : i32, i32
  }
  func.func @transform_2(%arg0: i32, %arg1: i32, %arg2: i32) -> (i32, i32, i32) {
    %c0_i32 = arith.constant 0 : i32
    return %arg0, %arg1, %arg2 : i32, i32, i32
  }
}

module attributes {stable_mosaic.version = 11 : i64} {
  func.func @_fused_mm_kernel(%arg0: i32, %arg1: i32, %arg2: i32, %arg3: memref<1x128x8xbf16, #tpu.memory_space<vmem>>, %arg4: memref<8x128xbf16, #tpu.memory_space<vmem>>, %arg5: memref<1x128x128xbf16, #tpu.memory_space<vmem>>) attributes {dimension_semantics = [#tpu.dimension_semantics<parallel>, #tpu.dimension_semantics<parallel>, #tpu.dimension_semantics<parallel>], iteration_bounds = array<i64: 1, 1, 1>, scalar_prefetch = 0 : i64, scratch_operands = 0 : i64, tpu.core_type = #tpu.core_type<tc>, window_params = [{transform_indices = @transform_0, window_bounds = array<i64: 1, 128, 8>}, {transform_indices = @transform_1, window_bounds = array<i64: 8, 128>}, {transform_indices = @transform_2, window_bounds = array<i64: 1, 128, 128>}]} {
    %c0 = arith.constant 0 : index
    %c0_0 = arith.constant 0 : index
    %c0_1 = arith.constant 0 : index
    %0 = vector.load %arg3[%c0, %c0_0, %c0_1] : memref<1x128x8xbf16, #tpu.memory_space<vmem>>, vector<1x128x8xbf16>
    %1 = vector.shape_cast %0 : vector<1x128x8xbf16> to vector<128x8xbf16>
    %c0_2 = arith.constant 0 : index
    %c0_3 = arith.constant 0 : index
    %2 = vector.load %arg4[%c0_2, %c0_3] : memref<8x128xbf16, #tpu.memory_space<vmem>>, vector<8x128xbf16>
    %cst = arith.constant dense<0.000000e+00> : vector<128x128xf32>
    %3 = tpu.matmul %1, %2, %cst {dimension_numbers = #tpu.dot_dimension_numbers<[1], [0], [0], [1], [0, 0, 1, 1], [], []>} : vector<128x8xbf16>, vector<8x128xbf16>, vector<128x128xf32> -> vector<128x128xf32>
    %cst_4 = arith.constant 0.000000e+00 : f32
    %4 = vector.broadcast %cst_4 : f32 to vector<128x128xf32>
    %5 = arith.maximumf %3, %4 : vector<128x128xf32>
    %6 = vector.shape_cast %5 : vector<128x128xf32> to vector<1x128x128xf32>
    %7 = arith.truncf %6 : vector<1x128x128xf32> to vector<1x128x128xbf16>
    %c0_5 = arith.constant 0 : index
    %c0_6 = arith.constant 0 : index
    %c0_7 = arith.constant 0 : index
    %8 = vector.load %arg5[%c0_5, %c0_6, %c0_7] : memref<1x128x128xbf16, #tpu.memory_space<vmem>>, vector<1x128x128xbf16>
    tpu.vector_store %arg5[%c0_5, %c0_6, %c0_7], %7 {strides = array<i32>} : memref<1x128x128xbf16, #tpu.memory_space<vmem>>, vector<1x128x128xbf16>,
    return
  }
  func.func @transform_0(%arg0: i32, %arg1: i32, %arg2: i32) -> (i32, i32, i32) {
    %c0_i32 = arith.constant 0 : i32
    %c0_i32_0 = arith.constant 0 : i32
    return %arg0, %arg1, %c0_i32 : i32, i32, i32
  }
  func.func @transform_1(%arg0: i32, %arg1: i32, %arg2: i32) -> (i32, i32) {
    %c0_i32 = arith.constant 0 : i32
    %c0_i32_0 = arith.constant 0 : i32
    return %c0_i32, %arg2 : i32, i32
  }
  func.func @transform_2(%arg0: i32, %arg1: i32, %arg2: i32) -> (i32, i32, i32) {
    %c0_i32 = arith.constant 0 : i32
    return %arg0, %arg1, %arg2 : i32, i32, i32
  }
}

module attributes {stable_mosaic.version = 11 : i64} {
  func.func @_fused_mm_kernel(%arg0: i32, %arg1: i32, %arg2: i32, %arg3: memref<1x32x144xbf16, #tpu.memory_space<vmem>>, %arg4: memref<144x128xbf16, #tpu.memory_space<vmem>>, %arg5: memref<1x32x128xbf16, #tpu.memory_space<vmem>>) attributes {dimension_semantics = [#tpu.dimension_semantics<parallel>, #tpu.dimension_semantics<parallel>, #tpu.dimension_semantics<parallel>], iteration_bounds = array<i64: 1, 1, 1>, scalar_prefetch = 0 : i64, scratch_operands = 0 : i64, tpu.core_type = #tpu.core_type<tc>, window_params = [{transform_indices = @transform_0, window_bounds = array<i64: 1, 32, 144>}, {transform_indices = @transform_1, window_bounds = array<i64: 144, 128>}, {transform_indices = @transform_2, window_bounds = array<i64: 1, 32, 128>}]} {
    %c0 = arith.constant 0 : index
    %c0_0 = arith.constant 0 : index
    %c0_1 = arith.constant 0 : index
    %0 = vector.load %arg3[%c0, %c0_0, %c0_1] : memref<1x32x144xbf16, #tpu.memory_space<vmem>>, vector<1x32x144xbf16>
    %1 = vector.shape_cast %0 : vector<1x32x144xbf16> to vector<32x144xbf16>
    %c0_2 = arith.constant 0 : index
    %c0_3 = arith.constant 0 : index
    %2 = vector.load %arg4[%c0_2, %c0_3] : memref<144x128xbf16, #tpu.memory_space<vmem>>, vector<144x128xbf16>
    %cst = arith.constant dense<0.000000e+00> : vector<32x128xf32>
    %3 = tpu.matmul %1, %2, %cst {dimension_numbers = #tpu.dot_dimension_numbers<[1], [0], [0], [1], [0, 0, 1, 1], [], []>} : vector<32x144xbf16>, vector<144x128xbf16>, vector<32x128xf32> -> vector<32x128xf32>
    %cst_4 = arith.constant 0.000000e+00 : f32
    %4 = vector.broadcast %cst_4 : f32 to vector<32x128xf32>
    %5 = arith.maximumf %3, %4 : vector<32x128xf32>
    %6 = vector.shape_cast %5 : vector<32x128xf32> to vector<1x32x128xf32>
    %7 = arith.truncf %6 : vector<1x32x128xf32> to vector<1x32x128xbf16>
    %c0_5 = arith.constant 0 : index
    %c0_6 = arith.constant 0 : index
    %c0_7 = arith.constant 0 : index
    %8 = vector.load %arg5[%c0_5, %c0_6, %c0_7] : memref<1x32x128xbf16, #tpu.memory_space<vmem>>, vector<1x32x128xbf16>
    tpu.vector_store %arg5[%c0_5, %c0_6, %c0_7], %7 {strides = array<i32>} : memref<1x32x128xbf16, #tpu.memory_space<vmem>>, vector<1x32x128xbf16>,
    return
  }
  func.func @transform_0(%arg0: i32, %arg1: i32, %arg2: i32) -> (i32, i32, i32) {
    %c0_i32 = arith.constant 0 : i32
    %c0_i32_0 = arith.constant 0 : i32
    return %arg0, %arg1, %c0_i32 : i32, i32, i32
  }
  func.func @transform_1(%arg0: i32, %arg1: i32, %arg2: i32) -> (i32, i32) {
    %c0_i32 = arith.constant 0 : i32
    %c0_i32_0 = arith.constant 0 : i32
    return %c0_i32, %arg2 : i32, i32
  }
  func.func @transform_2(%arg0: i32, %arg1: i32, %arg2: i32) -> (i32, i32, i32) {
    %c0_i32 = arith.constant 0 : i32
    return %arg0, %arg1, %arg2 : i32, i32, i32
  }
}

module attributes {stable_mosaic.version = 11 : i64} {
  func.func @_se_excite_kernel(%arg0: memref<2x128xf32, #tpu.memory_space<vmem>>, %arg1: memref<128x128xf32, #tpu.memory_space<vmem>>, %arg2: memref<1x128xf32, #tpu.memory_space<vmem>>, %arg3: memref<128x128xf32, #tpu.memory_space<vmem>>, %arg4: memref<1x128xf32, #tpu.memory_space<vmem>>, %arg5: memref<2x128xbf16, #tpu.memory_space<vmem>>) attributes {dimension_semantics = [], scalar_prefetch = 0 : i64, scratch_operands = 0 : i64, tpu.core_type = #tpu.core_type<tc>} {
    %c0 = arith.constant 0 : index
    %c0_0 = arith.constant 0 : index
    %0 = vector.load %arg0[%c0, %c0_0] : memref<2x128xf32, #tpu.memory_space<vmem>>, vector<2x128xf32>
    %c0_1 = arith.constant 0 : index
    %c0_2 = arith.constant 0 : index
    %1 = vector.load %arg1[%c0_1, %c0_2] : memref<128x128xf32, #tpu.memory_space<vmem>>, vector<128x128xf32>
    %cst = arith.constant dense<0.000000e+00> : vector<2x128xf32>
    %2 = tpu.matmul %0, %1, %cst {dimension_numbers = #tpu.dot_dimension_numbers<[1], [0], [0], [1], [0, 0, 1, 1], [], []>} : vector<2x128xf32>, vector<128x128xf32>, vector<2x128xf32> -> vector<2x128xf32>
    %c0_3 = arith.constant 0 : index
    %c0_4 = arith.constant 0 : index
    %3 = vector.load %arg2[%c0_3, %c0_4] : memref<1x128xf32, #tpu.memory_space<vmem>>, vector<1x128xf32>
    %4 = vector.broadcast %3 : vector<1x128xf32> to vector<2x128xf32>
    %5 = arith.addf %2, %4 : vector<2x128xf32>
    %cst_5 = arith.constant 0.000000e+00 : f32
    %6 = vector.broadcast %cst_5 : f32 to vector<2x128xf32>
    %7 = arith.maximumf %5, %6 : vector<2x128xf32>
    %c0_6 = arith.constant 0 : index
    %c0_7 = arith.constant 0 : index
    %8 = vector.load %arg3[%c0_6, %c0_7] : memref<128x128xf32, #tpu.memory_space<vmem>>, vector<128x128xf32>
    %cst_8 = arith.constant dense<0.000000e+00> : vector<2x128xf32>
    %9 = tpu.matmul %7, %8, %cst_8 {dimension_numbers = #tpu.dot_dimension_numbers<[1], [0], [0], [1], [0, 0, 1, 1], [], []>} : vector<2x128xf32>, vector<128x128xf32>, vector<2x128xf32> -> vector<2x128xf32>
    %c0_9 = arith.constant 0 : index
    %c0_10 = arith.constant 0 : index
    %10 = vector.load %arg4[%c0_9, %c0_10] : memref<1x128xf32, #tpu.memory_space<vmem>>, vector<1x128xf32>
    %11 = vector.broadcast %10 : vector<1x128xf32> to vector<2x128xf32>
    %12 = arith.addf %9, %11 : vector<2x128xf32>
    %13 = arith.negf %12 : vector<2x128xf32>
    %14 = math.exp %13 : vector<2x128xf32>
    %cst_11 = arith.constant 1.000000e+00 : f32
    %15 = vector.broadcast %cst_11 : f32 to vector<2x128xf32>
    %16 = arith.addf %15, %14 : vector<2x128xf32>
    %17 = arith.divf %15, %16 : vector<2x128xf32>
    %18 = arith.truncf %17 : vector<2x128xf32> to vector<2x128xbf16>
    %c0_12 = arith.constant 0 : index
    %c0_13 = arith.constant 0 : index
    %19 = vector.load %arg5[%c0_12, %c0_13] : memref<2x128xbf16, #tpu.memory_space<vmem>>, vector<2x128xbf16>
    tpu.vector_store %arg5[%c0_12, %c0_13], %18 {strides = array<i32>} : memref<2x128xbf16, #tpu.memory_space<vmem>>, vector<2x128xbf16>,
    return
  }
}

module attributes {stable_mosaic.version = 11 : i64} {
  func.func @_gap_kernel(%arg0: i32, %arg1: i32, %arg2: memref<1x16x128xbf16, #tpu.memory_space<vmem>>, %arg3: memref<1x1x128xf32, #tpu.memory_space<vmem>>) attributes {dimension_semantics = [#tpu.dimension_semantics<parallel>, #tpu.dimension_semantics<arbitrary>], iteration_bounds = array<i64: 2, 1>, scalar_prefetch = 0 : i64, scratch_operands = 0 : i64, tpu.core_type = #tpu.core_type<tc>, window_params = [{transform_indices = @transform_0, window_bounds = array<i64: 1, 16, 128>}, {transform_indices = @transform_1, window_bounds = array<i64: 1, 1, 128>}]} {
    %c0_i32 = arith.constant 0 : i32
    %0 = arith.cmpi eq, %arg1, %c0_i32 : i32
    %1 = arith.extui %0 : i1 to i32
    %c0_i32_0 = arith.constant 0 : i32
    %2 = arith.cmpi ne, %1, %c0_i32_0 : i32
    scf.if %2 {
      %cst_11 = arith.constant 0.000000e+00 : f32
      %13 = vector.broadcast %cst_11 : f32 to vector<1x1x128xf32>
      %c0_12 = arith.constant 0 : index
      %c0_13 = arith.constant 0 : index
      %c0_14 = arith.constant 0 : index
      %14 = vector.load %arg3[%c0_12, %c0_13, %c0_14] : memref<1x1x128xf32, #tpu.memory_space<vmem>>, vector<1x1x128xf32>
      tpu.vector_store %arg3[%c0_12, %c0_13, %c0_14], %13 {strides = array<i32>} : memref<1x1x128xf32, #tpu.memory_space<vmem>>, vector<1x1x128xf32>,
    } else {
    }
    %c0 = arith.constant 0 : index
    %c0_1 = arith.constant 0 : index
    %c0_2 = arith.constant 0 : index
    %3 = vector.load %arg3[%c0, %c0_1, %c0_2] : memref<1x1x128xf32, #tpu.memory_space<vmem>>, vector<1x1x128xf32>
    %c0_3 = arith.constant 0 : index
    %c0_4 = arith.constant 0 : index
    %c0_5 = arith.constant 0 : index
    %4 = vector.load %arg2[%c0_3, %c0_4, %c0_5] : memref<1x16x128xbf16, #tpu.memory_space<vmem>>, vector<1x16x128xbf16>
    %5 = arith.extf %4 : vector<1x16x128xbf16> to vector<1x16x128xf32>
    %cst = arith.constant dense<0.000000e+00> : vector<1x128xf32>
    %6 = vector.multi_reduction <add>, %5, %cst [1] : vector<1x16x128xf32> to vector<1x128xf32>
    %7 = vector.shape_cast %6 : vector<1x128xf32> to vector<1x1x128xf32>
    %8 = arith.addf %3, %7 : vector<1x1x128xf32>
    %c0_6 = arith.constant 0 : index
    %c0_7 = arith.constant 0 : index
    %c0_8 = arith.constant 0 : index
    %9 = vector.load %arg3[%c0_6, %c0_7, %c0_8] : memref<1x1x128xf32, #tpu.memory_space<vmem>>, vector<1x1x128xf32>
    tpu.vector_store %arg3[%c0_6, %c0_7, %c0_8], %8 {strides = array<i32>} : memref<1x1x128xf32, #tpu.memory_space<vmem>>, vector<1x1x128xf32>,
    %c0_i32_9 = arith.constant 0 : i32
    %10 = arith.cmpi eq, %arg1, %c0_i32_9 : i32
    %11 = arith.extui %10 : i1 to i32
    %c0_i32_10 = arith.constant 0 : i32
    %12 = arith.cmpi ne, %11, %c0_i32_10 : i32
    scf.if %12 {
      %c0_11 = arith.constant 0 : index
      %c0_12 = arith.constant 0 : index
      %c0_13 = arith.constant 0 : index
      %13 = vector.load %arg3[%c0_11, %c0_12, %c0_13] : memref<1x1x128xf32, #tpu.memory_space<vmem>>, vector<1x1x128xf32>
      %cst_14 = arith.constant 6.250000e-02 : f32
      %14 = vector.broadcast %cst_14 : f32 to vector<1x1x128xf32>
      %15 = arith.mulf %13, %14 : vector<1x1x128xf32>
      %c0_15 = arith.constant 0 : index
      %c0_16 = arith.constant 0 : index
      %c0_17 = arith.constant 0 : index
      %16 = vector.load %arg3[%c0_15, %c0_16, %c0_17] : memref<1x1x128xf32, #tpu.memory_space<vmem>>, vector<1x1x128xf32>
      tpu.vector_store %arg3[%c0_15, %c0_16, %c0_17], %15 {strides = array<i32>} : memref<1x1x128xf32, #tpu.memory_space<vmem>>, vector<1x1x128xf32>,
    } else {
    }
    return
  }
  func.func @transform_0(%arg0: i32, %arg1: i32) -> (i32, i32, i32) {
    %c0_i32 = arith.constant 0 : i32
    %c0_i32_0 = arith.constant 0 : i32
    return %arg0, %arg1, %c0_i32 : i32, i32, i32
  }
  func.func @transform_1(%arg0: i32, %arg1: i32) -> (i32, i32, i32) {
    %c0_i32 = arith.constant 0 : i32
    %c0_i32_0 = arith.constant 0 : i32
    %c0_i32_1 = arith.constant 0 : i32
    return %arg0, %c0_i32, %c0_i32_0 : i32, i32, i32
  }
}

module attributes {stable_mosaic.version = 11 : i64} {
  func.func @_fused_mm_kernel(%arg0: i32, %arg1: i32, %arg2: i32, %arg3: memref<1x32x8xbf16, #tpu.memory_space<vmem>>, %arg4: memref<8x128xbf16, #tpu.memory_space<vmem>>, %arg5: memref<1x32x128xbf16, #tpu.memory_space<vmem>>) attributes {dimension_semantics = [#tpu.dimension_semantics<parallel>, #tpu.dimension_semantics<parallel>, #tpu.dimension_semantics<parallel>], iteration_bounds = array<i64: 1, 1, 1>, scalar_prefetch = 0 : i64, scratch_operands = 0 : i64, tpu.core_type = #tpu.core_type<tc>, window_params = [{transform_indices = @transform_0, window_bounds = array<i64: 1, 32, 8>}, {transform_indices = @transform_1, window_bounds = array<i64: 8, 128>}, {transform_indices = @transform_2, window_bounds = array<i64: 1, 32, 128>}]} {
    %c0 = arith.constant 0 : index
    %c0_0 = arith.constant 0 : index
    %c0_1 = arith.constant 0 : index
    %0 = vector.load %arg3[%c0, %c0_0, %c0_1] : memref<1x32x8xbf16, #tpu.memory_space<vmem>>, vector<1x32x8xbf16>
    %1 = vector.shape_cast %0 : vector<1x32x8xbf16> to vector<32x8xbf16>
    %c0_2 = arith.constant 0 : index
    %c0_3 = arith.constant 0 : index
    %2 = vector.load %arg4[%c0_2, %c0_3] : memref<8x128xbf16, #tpu.memory_space<vmem>>, vector<8x128xbf16>
    %cst = arith.constant dense<0.000000e+00> : vector<32x128xf32>
    %3 = tpu.matmul %1, %2, %cst {dimension_numbers = #tpu.dot_dimension_numbers<[1], [0], [0], [1], [0, 0, 1, 1], [], []>} : vector<32x8xbf16>, vector<8x128xbf16>, vector<32x128xf32> -> vector<32x128xf32>
    %4 = vector.shape_cast %3 : vector<32x128xf32> to vector<1x32x128xf32>
    %5 = arith.truncf %4 : vector<1x32x128xf32> to vector<1x32x128xbf16>
    %c0_4 = arith.constant 0 : index
    %c0_5 = arith.constant 0 : index
    %c0_6 = arith.constant 0 : index
    %6 = vector.load %arg5[%c0_4, %c0_5, %c0_6] : memref<1x32x128xbf16, #tpu.memory_space<vmem>>, vector<1x32x128xbf16>
    tpu.vector_store %arg5[%c0_4, %c0_5, %c0_6], %5 {strides = array<i32>} : memref<1x32x128xbf16, #tpu.memory_space<vmem>>, vector<1x32x128xbf16>,
    return
  }
  func.func @transform_0(%arg0: i32, %arg1: i32, %arg2: i32) -> (i32, i32, i32) {
    %c0_i32 = arith.constant 0 : i32
    %c0_i32_0 = arith.constant 0 : i32
    return %arg0, %arg1, %c0_i32 : i32, i32, i32
  }
  func.func @transform_1(%arg0: i32, %arg1: i32, %arg2: i32) -> (i32, i32) {
    %c0_i32 = arith.constant 0 : i32
    %c0_i32_0 = arith.constant 0 : i32
    return %c0_i32, %arg2 : i32, i32
  }
  func.func @transform_2(%arg0: i32, %arg1: i32, %arg2: i32) -> (i32, i32, i32) {
    %c0_i32 = arith.constant 0 : i32
    return %arg0, %arg1, %arg2 : i32, i32, i32
  }
}

module attributes {stable_mosaic.version = 11 : i64} {
  func.func @_fused_mm_kernel(%arg0: i32, %arg1: i32, %arg2: i32, %arg3: memref<1x32x16xbf16, #tpu.memory_space<vmem>>, %arg4: memref<16x128xbf16, #tpu.memory_space<vmem>>, %arg5: memref<1x32x128xbf16, #tpu.memory_space<vmem>>) attributes {dimension_semantics = [#tpu.dimension_semantics<parallel>, #tpu.dimension_semantics<parallel>, #tpu.dimension_semantics<parallel>], iteration_bounds = array<i64: 1, 1, 1>, scalar_prefetch = 0 : i64, scratch_operands = 0 : i64, tpu.core_type = #tpu.core_type<tc>, window_params = [{transform_indices = @transform_0, window_bounds = array<i64: 1, 32, 16>}, {transform_indices = @transform_1, window_bounds = array<i64: 16, 128>}, {transform_indices = @transform_2, window_bounds = array<i64: 1, 32, 128>}]} {
    %c0 = arith.constant 0 : index
    %c0_0 = arith.constant 0 : index
    %c0_1 = arith.constant 0 : index
    %0 = vector.load %arg3[%c0, %c0_0, %c0_1] : memref<1x32x16xbf16, #tpu.memory_space<vmem>>, vector<1x32x16xbf16>
    %1 = vector.shape_cast %0 : vector<1x32x16xbf16> to vector<32x16xbf16>
    %c0_2 = arith.constant 0 : index
    %c0_3 = arith.constant 0 : index
    %2 = vector.load %arg4[%c0_2, %c0_3] : memref<16x128xbf16, #tpu.memory_space<vmem>>, vector<16x128xbf16>
    %cst = arith.constant dense<0.000000e+00> : vector<32x128xf32>
    %3 = tpu.matmul %1, %2, %cst {dimension_numbers = #tpu.dot_dimension_numbers<[1], [0], [0], [1], [0, 0, 1, 1], [], []>} : vector<32x16xbf16>, vector<16x128xbf16>, vector<32x128xf32> -> vector<32x128xf32>
    %cst_4 = arith.constant 0.000000e+00 : f32
    %4 = vector.broadcast %cst_4 : f32 to vector<32x128xf32>
    %5 = arith.maximumf %3, %4 : vector<32x128xf32>
    %6 = vector.shape_cast %5 : vector<32x128xf32> to vector<1x32x128xf32>
    %7 = arith.truncf %6 : vector<1x32x128xf32> to vector<1x32x128xbf16>
    %c0_5 = arith.constant 0 : index
    %c0_6 = arith.constant 0 : index
    %c0_7 = arith.constant 0 : index
    %8 = vector.load %arg5[%c0_5, %c0_6, %c0_7] : memref<1x32x128xbf16, #tpu.memory_space<vmem>>, vector<1x32x128xbf16>
    tpu.vector_store %arg5[%c0_5, %c0_6, %c0_7], %7 {strides = array<i32>} : memref<1x32x128xbf16, #tpu.memory_space<vmem>>, vector<1x32x128xbf16>,
    return
  }
  func.func @transform_0(%arg0: i32, %arg1: i32, %arg2: i32) -> (i32, i32, i32) {
    %c0_i32 = arith.constant 0 : i32
    %c0_i32_0 = arith.constant 0 : i32
    return %arg0, %arg1, %c0_i32 : i32, i32, i32
  }
  func.func @transform_1(%arg0: i32, %arg1: i32, %arg2: i32) -> (i32, i32) {
    %c0_i32 = arith.constant 0 : i32
    %c0_i32_0 = arith.constant 0 : i32
    return %c0_i32, %arg2 : i32, i32
  }
  func.func @transform_2(%arg0: i32, %arg1: i32, %arg2: i32) -> (i32, i32, i32) {
    %c0_i32 = arith.constant 0 : i32
    return %arg0, %arg1, %arg2 : i32, i32, i32
  }
}

module attributes {stable_mosaic.version = 11 : i64} {
  func.func @_fused_mm_kernel(%arg0: i32, %arg1: i32, %arg2: i32, %arg3: memref<1x16x16xbf16, #tpu.memory_space<vmem>>, %arg4: memref<16x128xbf16, #tpu.memory_space<vmem>>, %arg5: memref<1x1x16xbf16, #tpu.memory_space<vmem>>, %arg6: memref<1x16x128xbf16, #tpu.memory_space<vmem>>, %arg7: memref<1x16x128xbf16, #tpu.memory_space<vmem>>) attributes {dimension_semantics = [#tpu.dimension_semantics<parallel>, #tpu.dimension_semantics<parallel>, #tpu.dimension_semantics<parallel>], iteration_bounds = array<i64: 2, 1, 1>, scalar_prefetch = 0 : i64, scratch_operands = 0 : i64, tpu.core_type = #tpu.core_type<tc>, window_params = [{transform_indices = @transform_0, window_bounds = array<i64: 1, 16, 16>}, {transform_indices = @transform_1, window_bounds = array<i64: 16, 128>}, {transform_indices = @transform_2, window_bounds = array<i64: 1, 1, 16>}, {transform_indices = @transform_3, window_bounds = array<i64: 1, 16, 128>}, {transform_indices = @transform_4, window_bounds = array<i64: 1, 16, 128>}]} {
    %c0 = arith.constant 0 : index
    %c0_0 = arith.constant 0 : index
    %c0_1 = arith.constant 0 : index
    %0 = vector.load %arg3[%c0, %c0_0, %c0_1] : memref<1x16x16xbf16, #tpu.memory_space<vmem>>, vector<1x16x16xbf16>
    %1 = vector.shape_cast %0 : vector<1x16x16xbf16> to vector<16x16xbf16>
    %c0_2 = arith.constant 0 : index
    %c0_3 = arith.constant 0 : index
    %c0_4 = arith.constant 0 : index
    %2 = vector.load %arg5[%c0_2, %c0_3, %c0_4] : memref<1x1x16xbf16, #tpu.memory_space<vmem>>, vector<1x1x16xbf16>
    %3 = vector.shape_cast %2 : vector<1x1x16xbf16> to vector<1x16xbf16>
    %4 = vector.broadcast %3 : vector<1x16xbf16> to vector<16x16xbf16>
    %5 = arith.mulf %1, %4 : vector<16x16xbf16>
    %c0_5 = arith.constant 0 : index
    %c0_6 = arith.constant 0 : index
    %6 = vector.load %arg4[%c0_5, %c0_6] : memref<16x128xbf16, #tpu.memory_space<vmem>>, vector<16x128xbf16>
    %cst = arith.constant dense<0.000000e+00> : vector<16x128xf32>
    %7 = tpu.matmul %5, %6, %cst {dimension_numbers = #tpu.dot_dimension_numbers<[1], [0], [0], [1], [0, 0, 1, 1], [], []>} : vector<16x16xbf16>, vector<16x128xbf16>, vector<16x128xf32> -> vector<16x128xf32>
    %c0_7 = arith.constant 0 : index
    %c0_8 = arith.constant 0 : index
    %c0_9 = arith.constant 0 : index
    %8 = vector.load %arg6[%c0_7, %c0_8, %c0_9] : memref<1x16x128xbf16, #tpu.memory_space<vmem>>, vector<1x16x128xbf16>
    %9 = vector.shape_cast %8 : vector<1x16x128xbf16> to vector<16x128xbf16>
    %10 = arith.extf %9 : vector<16x128xbf16> to vector<16x128xf32>
    %11 = arith.addf %7, %10 : vector<16x128xf32>
    %cst_10 = arith.constant 0.000000e+00 : f32
    %12 = vector.broadcast %cst_10 : f32 to vector<16x128xf32>
    %13 = arith.maximumf %11, %12 : vector<16x128xf32>
    %14 = vector.shape_cast %13 : vector<16x128xf32> to vector<1x16x128xf32>
    %15 = arith.truncf %14 : vector<1x16x128xf32> to vector<1x16x128xbf16>
    %c0_11 = arith.constant 0 : index
    %c0_12 = arith.constant 0 : index
    %c0_13 = arith.constant 0 : index
    %16 = vector.load %arg7[%c0_11, %c0_12, %c0_13] : memref<1x16x128xbf16, #tpu.memory_space<vmem>>, vector<1x16x128xbf16>
    tpu.vector_store %arg7[%c0_11, %c0_12, %c0_13], %15 {strides = array<i32>} : memref<1x16x128xbf16, #tpu.memory_space<vmem>>, vector<1x16x128xbf16>,
    return
  }
  func.func @transform_0(%arg0: i32, %arg1: i32, %arg2: i32) -> (i32, i32, i32) {
    %c0_i32 = arith.constant 0 : i32
    %c0_i32_0 = arith.constant 0 : i32
    return %arg0, %arg1, %c0_i32 : i32, i32, i32
  }
  func.func @transform_1(%arg0: i32, %arg1: i32, %arg2: i32) -> (i32, i32) {
    %c0_i32 = arith.constant 0 : i32
    %c0_i32_0 = arith.constant 0 : i32
    return %c0_i32, %arg2 : i32, i32
  }
  func.func @transform_2(%arg0: i32, %arg1: i32, %arg2: i32) -> (i32, i32, i32) {
    %c0_i32 = arith.constant 0 : i32
    %c0_i32_0 = arith.constant 0 : i32
    %c0_i32_1 = arith.constant 0 : i32
    return %arg0, %c0_i32, %c0_i32_0 : i32, i32, i32
  }
  func.func @transform_3(%arg0: i32, %arg1: i32, %arg2: i32) -> (i32, i32, i32) {
    %c0_i32 = arith.constant 0 : i32
    return %arg0, %arg1, %arg2 : i32, i32, i32
  }
  func.func @transform_4(%arg0: i32, %arg1: i32, %arg2: i32) -> (i32, i32, i32) {
    %c0_i32 = arith.constant 0 : i32
    return %arg0, %arg1, %arg2 : i32, i32, i32
  }
}

module attributes {stable_mosaic.version = 11 : i64} {
  func.func @_fused_mm_kernel(%arg0: i32, %arg1: i32, %arg2: i32, %arg3: memref<1x8x288xbf16, #tpu.memory_space<vmem>>, %arg4: memref<288x128xbf16, #tpu.memory_space<vmem>>, %arg5: memref<1x8x128xbf16, #tpu.memory_space<vmem>>) attributes {dimension_semantics = [#tpu.dimension_semantics<parallel>, #tpu.dimension_semantics<parallel>, #tpu.dimension_semantics<parallel>], iteration_bounds = array<i64: 1, 1, 1>, scalar_prefetch = 0 : i64, scratch_operands = 0 : i64, tpu.core_type = #tpu.core_type<tc>, window_params = [{transform_indices = @transform_0, window_bounds = array<i64: 1, 8, 288>}, {transform_indices = @transform_1, window_bounds = array<i64: 288, 128>}, {transform_indices = @transform_2, window_bounds = array<i64: 1, 8, 128>}]} {
    %c0 = arith.constant 0 : index
    %c0_0 = arith.constant 0 : index
    %c0_1 = arith.constant 0 : index
    %0 = vector.load %arg3[%c0, %c0_0, %c0_1] : memref<1x8x288xbf16, #tpu.memory_space<vmem>>, vector<1x8x288xbf16>
    %1 = vector.shape_cast %0 : vector<1x8x288xbf16> to vector<8x288xbf16>
    %c0_2 = arith.constant 0 : index
    %c0_3 = arith.constant 0 : index
    %2 = vector.load %arg4[%c0_2, %c0_3] : memref<288x128xbf16, #tpu.memory_space<vmem>>, vector<288x128xbf16>
    %cst = arith.constant dense<0.000000e+00> : vector<8x128xf32>
    %3 = tpu.matmul %1, %2, %cst {dimension_numbers = #tpu.dot_dimension_numbers<[1], [0], [0], [1], [0, 0, 1, 1], [], []>} : vector<8x288xbf16>, vector<288x128xbf16>, vector<8x128xf32> -> vector<8x128xf32>
    %cst_4 = arith.constant 0.000000e+00 : f32
    %4 = vector.broadcast %cst_4 : f32 to vector<8x128xf32>
    %5 = arith.maximumf %3, %4 : vector<8x128xf32>
    %6 = vector.shape_cast %5 : vector<8x128xf32> to vector<1x8x128xf32>
    %7 = arith.truncf %6 : vector<1x8x128xf32> to vector<1x8x128xbf16>
    %c0_5 = arith.constant 0 : index
    %c0_6 = arith.constant 0 : index
    %c0_7 = arith.constant 0 : index
    %8 = vector.load %arg5[%c0_5, %c0_6, %c0_7] : memref<1x8x128xbf16, #tpu.memory_space<vmem>>, vector<1x8x128xbf16>
    tpu.vector_store %arg5[%c0_5, %c0_6, %c0_7], %7 {strides = array<i32>} : memref<1x8x128xbf16, #tpu.memory_space<vmem>>, vector<1x8x128xbf16>,
    return
  }
  func.func @transform_0(%arg0: i32, %arg1: i32, %arg2: i32) -> (i32, i32, i32) {
    %c0_i32 = arith.constant 0 : i32
    %c0_i32_0 = arith.constant 0 : i32
    return %arg0, %arg1, %c0_i32 : i32, i32, i32
  }
  func.func @transform_1(%arg0: i32, %arg1: i32, %arg2: i32) -> (i32, i32) {
    %c0_i32 = arith.constant 0 : i32
    %c0_i32_0 = arith.constant 0 : i32
    return %c0_i32, %arg2 : i32, i32
  }
  func.func @transform_2(%arg0: i32, %arg1: i32, %arg2: i32) -> (i32, i32, i32) {
    %c0_i32 = arith.constant 0 : i32
    return %arg0, %arg1, %arg2 : i32, i32, i32
  }
}

module attributes {stable_mosaic.version = 11 : i64} {
  func.func @_fused_mm_kernel(%arg0: i32, %arg1: i32, %arg2: i32, %arg3: memref<1x8x32xbf16, #tpu.memory_space<vmem>>, %arg4: memref<32x128xbf16, #tpu.memory_space<vmem>>, %arg5: memref<1x1x32xbf16, #tpu.memory_space<vmem>>, %arg6: memref<1x8x128xbf16, #tpu.memory_space<vmem>>, %arg7: memref<1x8x128xbf16, #tpu.memory_space<vmem>>) attributes {dimension_semantics = [#tpu.dimension_semantics<parallel>, #tpu.dimension_semantics<parallel>, #tpu.dimension_semantics<parallel>], iteration_bounds = array<i64: 2, 1, 1>, scalar_prefetch = 0 : i64, scratch_operands = 0 : i64, tpu.core_type = #tpu.core_type<tc>, window_params = [{transform_indices = @transform_0, window_bounds = array<i64: 1, 8, 32>}, {transform_indices = @transform_1, window_bounds = array<i64: 32, 128>}, {transform_indices = @transform_2, window_bounds = array<i64: 1, 1, 32>}, {transform_indices = @transform_3, window_bounds = array<i64: 1, 8, 128>}, {transform_indices = @transform_4, window_bounds = array<i64: 1, 8, 128>}]} {
    %c0 = arith.constant 0 : index
    %c0_0 = arith.constant 0 : index
    %c0_1 = arith.constant 0 : index
    %0 = vector.load %arg3[%c0, %c0_0, %c0_1] : memref<1x8x32xbf16, #tpu.memory_space<vmem>>, vector<1x8x32xbf16>
    %1 = vector.shape_cast %0 : vector<1x8x32xbf16> to vector<8x32xbf16>
    %c0_2 = arith.constant 0 : index
    %c0_3 = arith.constant 0 : index
    %c0_4 = arith.constant 0 : index
    %2 = vector.load %arg5[%c0_2, %c0_3, %c0_4] : memref<1x1x32xbf16, #tpu.memory_space<vmem>>, vector<1x1x32xbf16>
    %3 = vector.shape_cast %2 : vector<1x1x32xbf16> to vector<1x32xbf16>
    %4 = vector.broadcast %3 : vector<1x32xbf16> to vector<8x32xbf16>
    %5 = arith.mulf %1, %4 : vector<8x32xbf16>
    %c0_5 = arith.constant 0 : index
    %c0_6 = arith.constant 0 : index
    %6 = vector.load %arg4[%c0_5, %c0_6] : memref<32x128xbf16, #tpu.memory_space<vmem>>, vector<32x128xbf16>
    %cst = arith.constant dense<0.000000e+00> : vector<8x128xf32>
    %7 = tpu.matmul %5, %6, %cst {dimension_numbers = #tpu.dot_dimension_numbers<[1], [0], [0], [1], [0, 0, 1, 1], [], []>} : vector<8x32xbf16>, vector<32x128xbf16>, vector<8x128xf32> -> vector<8x128xf32>
    %c0_7 = arith.constant 0 : index
    %c0_8 = arith.constant 0 : index
    %c0_9 = arith.constant 0 : index
    %8 = vector.load %arg6[%c0_7, %c0_8, %c0_9] : memref<1x8x128xbf16, #tpu.memory_space<vmem>>, vector<1x8x128xbf16>
    %9 = vector.shape_cast %8 : vector<1x8x128xbf16> to vector<8x128xbf16>
    %10 = arith.extf %9 : vector<8x128xbf16> to vector<8x128xf32>
    %11 = arith.addf %7, %10 : vector<8x128xf32>
    %cst_10 = arith.constant 0.000000e+00 : f32
    %12 = vector.broadcast %cst_10 : f32 to vector<8x128xf32>
    %13 = arith.maximumf %11, %12 : vector<8x128xf32>
    %14 = vector.shape_cast %13 : vector<8x128xf32> to vector<1x8x128xf32>
    %15 = arith.truncf %14 : vector<1x8x128xf32> to vector<1x8x128xbf16>
    %c0_11 = arith.constant 0 : index
    %c0_12 = arith.constant 0 : index
    %c0_13 = arith.constant 0 : index
    %16 = vector.load %arg7[%c0_11, %c0_12, %c0_13] : memref<1x8x128xbf16, #tpu.memory_space<vmem>>, vector<1x8x128xbf16>
    tpu.vector_store %arg7[%c0_11, %c0_12, %c0_13], %15 {strides = array<i32>} : memref<1x8x128xbf16, #tpu.memory_space<vmem>>, vector<1x8x128xbf16>,
    return
  }
  func.func @transform_0(%arg0: i32, %arg1: i32, %arg2: i32) -> (i32, i32, i32) {
    %c0_i32 = arith.constant 0 : i32
    %c0_i32_0 = arith.constant 0 : i32
    return %arg0, %arg1, %c0_i32 : i32, i32, i32
  }
  func.func @transform_1(%arg0: i32, %arg1: i32, %arg2: i32) -> (i32, i32) {
    %c0_i32 = arith.constant 0 : i32
    %c0_i32_0 = arith.constant 0 : i32
    return %c0_i32, %arg2 : i32, i32
  }
  func.func @transform_2(%arg0: i32, %arg1: i32, %arg2: i32) -> (i32, i32, i32) {
    %c0_i32 = arith.constant 0 : i32
    %c0_i32_0 = arith.constant 0 : i32
    %c0_i32_1 = arith.constant 0 : i32
    return %arg0, %c0_i32, %c0_i32_0 : i32, i32, i32
  }
  func.func @transform_3(%arg0: i32, %arg1: i32, %arg2: i32) -> (i32, i32, i32) {
    %c0_i32 = arith.constant 0 : i32
    return %arg0, %arg1, %arg2 : i32, i32, i32
  }
  func.func @transform_4(%arg0: i32, %arg1: i32, %arg2: i32) -> (i32, i32, i32) {
    %c0_i32 = arith.constant 0 : i32
    return %arg0, %arg1, %arg2 : i32, i32, i32
  }
}

module attributes {stable_mosaic.version = 11 : i64} {
  func.func @_gap_kernel(%arg0: i32, %arg1: i32, %arg2: memref<1x4x128xbf16, #tpu.memory_space<vmem>>, %arg3: memref<1x1x128xf32, #tpu.memory_space<vmem>>) attributes {dimension_semantics = [#tpu.dimension_semantics<parallel>, #tpu.dimension_semantics<arbitrary>], iteration_bounds = array<i64: 2, 1>, scalar_prefetch = 0 : i64, scratch_operands = 0 : i64, tpu.core_type = #tpu.core_type<tc>, window_params = [{transform_indices = @transform_0, window_bounds = array<i64: 1, 4, 128>}, {transform_indices = @transform_1, window_bounds = array<i64: 1, 1, 128>}]} {
    %c0_i32 = arith.constant 0 : i32
    %0 = arith.cmpi eq, %arg1, %c0_i32 : i32
    %1 = arith.extui %0 : i1 to i32
    %c0_i32_0 = arith.constant 0 : i32
    %2 = arith.cmpi ne, %1, %c0_i32_0 : i32
    scf.if %2 {
      %cst_11 = arith.constant 0.000000e+00 : f32
      %13 = vector.broadcast %cst_11 : f32 to vector<1x1x128xf32>
      %c0_12 = arith.constant 0 : index
      %c0_13 = arith.constant 0 : index
      %c0_14 = arith.constant 0 : index
      %14 = vector.load %arg3[%c0_12, %c0_13, %c0_14] : memref<1x1x128xf32, #tpu.memory_space<vmem>>, vector<1x1x128xf32>
      tpu.vector_store %arg3[%c0_12, %c0_13, %c0_14], %13 {strides = array<i32>} : memref<1x1x128xf32, #tpu.memory_space<vmem>>, vector<1x1x128xf32>,
    } else {
    }
    %c0 = arith.constant 0 : index
    %c0_1 = arith.constant 0 : index
    %c0_2 = arith.constant 0 : index
    %3 = vector.load %arg3[%c0, %c0_1, %c0_2] : memref<1x1x128xf32, #tpu.memory_space<vmem>>, vector<1x1x128xf32>
    %c0_3 = arith.constant 0 : index
    %c0_4 = arith.constant 0 : index
    %c0_5 = arith.constant 0 : index
    %4 = vector.load %arg2[%c0_3, %c0_4, %c0_5] : memref<1x4x128xbf16, #tpu.memory_space<vmem>>, vector<1x4x128xbf16>
    %5 = arith.extf %4 : vector<1x4x128xbf16> to vector<1x4x128xf32>
    %cst = arith.constant dense<0.000000e+00> : vector<1x128xf32>
    %6 = vector.multi_reduction <add>, %5, %cst [1] : vector<1x4x128xf32> to vector<1x128xf32>
    %7 = vector.shape_cast %6 : vector<1x128xf32> to vector<1x1x128xf32>
    %8 = arith.addf %3, %7 : vector<1x1x128xf32>
    %c0_6 = arith.constant 0 : index
    %c0_7 = arith.constant 0 : index
    %c0_8 = arith.constant 0 : index
    %9 = vector.load %arg3[%c0_6, %c0_7, %c0_8] : memref<1x1x128xf32, #tpu.memory_space<vmem>>, vector<1x1x128xf32>
    tpu.vector_store %arg3[%c0_6, %c0_7, %c0_8], %8 {strides = array<i32>} : memref<1x1x128xf32, #tpu.memory_space<vmem>>, vector<1x1x128xf32>,
    %c0_i32_9 = arith.constant 0 : i32
    %10 = arith.cmpi eq, %arg1, %c0_i32_9 : i32
    %11 = arith.extui %10 : i1 to i32
    %c0_i32_10 = arith.constant 0 : i32
    %12 = arith.cmpi ne, %11, %c0_i32_10 : i32
    scf.if %12 {
      %c0_11 = arith.constant 0 : index
      %c0_12 = arith.constant 0 : index
      %c0_13 = arith.constant 0 : index
      %13 = vector.load %arg3[%c0_11, %c0_12, %c0_13] : memref<1x1x128xf32, #tpu.memory_space<vmem>>, vector<1x1x128xf32>
      %cst_14 = arith.constant 2.500000e-01 : f32
      %14 = vector.broadcast %cst_14 : f32 to vector<1x1x128xf32>
      %15 = arith.mulf %13, %14 : vector<1x1x128xf32>
      %c0_15 = arith.constant 0 : index
      %c0_16 = arith.constant 0 : index
      %c0_17 = arith.constant 0 : index
      %16 = vector.load %arg3[%c0_15, %c0_16, %c0_17] : memref<1x1x128xf32, #tpu.memory_space<vmem>>, vector<1x1x128xf32>
      tpu.vector_store %arg3[%c0_15, %c0_16, %c0_17], %15 {strides = array<i32>} : memref<1x1x128xf32, #tpu.memory_space<vmem>>, vector<1x1x128xf32>,
    } else {
    }
    return
  }
  func.func @transform_0(%arg0: i32, %arg1: i32) -> (i32, i32, i32) {
    %c0_i32 = arith.constant 0 : i32
    %c0_i32_0 = arith.constant 0 : i32
    return %arg0, %arg1, %c0_i32 : i32, i32, i32
  }
  func.func @transform_1(%arg0: i32, %arg1: i32) -> (i32, i32, i32) {
    %c0_i32 = arith.constant 0 : i32
    %c0_i32_0 = arith.constant 0 : i32
    %c0_i32_1 = arith.constant 0 : i32
    return %arg0, %c0_i32, %c0_i32_0 : i32, i32, i32
  }
}

module attributes {stable_mosaic.version = 11 : i64} {
  func.func @_fused_mm_kernel(%arg0: i32, %arg1: i32, %arg2: i32, %arg3: memref<1x8x16xbf16, #tpu.memory_space<vmem>>, %arg4: memref<16x128xbf16, #tpu.memory_space<vmem>>, %arg5: memref<1x8x128xbf16, #tpu.memory_space<vmem>>) attributes {dimension_semantics = [#tpu.dimension_semantics<parallel>, #tpu.dimension_semantics<parallel>, #tpu.dimension_semantics<parallel>], iteration_bounds = array<i64: 1, 1, 1>, scalar_prefetch = 0 : i64, scratch_operands = 0 : i64, tpu.core_type = #tpu.core_type<tc>, window_params = [{transform_indices = @transform_0, window_bounds = array<i64: 1, 8, 16>}, {transform_indices = @transform_1, window_bounds = array<i64: 16, 128>}, {transform_indices = @transform_2, window_bounds = array<i64: 1, 8, 128>}]} {
    %c0 = arith.constant 0 : index
    %c0_0 = arith.constant 0 : index
    %c0_1 = arith.constant 0 : index
    %0 = vector.load %arg3[%c0, %c0_0, %c0_1] : memref<1x8x16xbf16, #tpu.memory_space<vmem>>, vector<1x8x16xbf16>
    %1 = vector.shape_cast %0 : vector<1x8x16xbf16> to vector<8x16xbf16>
    %c0_2 = arith.constant 0 : index
    %c0_3 = arith.constant 0 : index
    %2 = vector.load %arg4[%c0_2, %c0_3] : memref<16x128xbf16, #tpu.memory_space<vmem>>, vector<16x128xbf16>
    %cst = arith.constant dense<0.000000e+00> : vector<8x128xf32>
    %3 = tpu.matmul %1, %2, %cst {dimension_numbers = #tpu.dot_dimension_numbers<[1], [0], [0], [1], [0, 0, 1, 1], [], []>} : vector<8x16xbf16>, vector<16x128xbf16>, vector<8x128xf32> -> vector<8x128xf32>
    %4 = vector.shape_cast %3 : vector<8x128xf32> to vector<1x8x128xf32>
    %5 = arith.truncf %4 : vector<1x8x128xf32> to vector<1x8x128xbf16>
    %c0_4 = arith.constant 0 : index
    %c0_5 = arith.constant 0 : index
    %c0_6 = arith.constant 0 : index
    %6 = vector.load %arg5[%c0_4, %c0_5, %c0_6] : memref<1x8x128xbf16, #tpu.memory_space<vmem>>, vector<1x8x128xbf16>
    tpu.vector_store %arg5[%c0_4, %c0_5, %c0_6], %5 {strides = array<i32>} : memref<1x8x128xbf16, #tpu.memory_space<vmem>>, vector<1x8x128xbf16>,
    return
  }
  func.func @transform_0(%arg0: i32, %arg1: i32, %arg2: i32) -> (i32, i32, i32) {
    %c0_i32 = arith.constant 0 : i32
    %c0_i32_0 = arith.constant 0 : i32
    return %arg0, %arg1, %c0_i32 : i32, i32, i32
  }
  func.func @transform_1(%arg0: i32, %arg1: i32, %arg2: i32) -> (i32, i32) {
    %c0_i32 = arith.constant 0 : i32
    %c0_i32_0 = arith.constant 0 : i32
    return %c0_i32, %arg2 : i32, i32
  }
  func.func @transform_2(%arg0: i32, %arg1: i32, %arg2: i32) -> (i32, i32, i32) {
    %c0_i32 = arith.constant 0 : i32
    return %arg0, %arg1, %arg2 : i32, i32, i32
  }
}

module attributes {stable_mosaic.version = 11 : i64} {
  func.func @_fused_mm_kernel(%arg0: i32, %arg1: i32, %arg2: i32, %arg3: memref<1x8x32xbf16, #tpu.memory_space<vmem>>, %arg4: memref<32x128xbf16, #tpu.memory_space<vmem>>, %arg5: memref<1x1x128xf32, #tpu.memory_space<vmem>>, %arg6: memref<1x8x128xf32, #tpu.memory_space<vmem>>) attributes {dimension_semantics = [#tpu.dimension_semantics<parallel>, #tpu.dimension_semantics<parallel>, #tpu.dimension_semantics<parallel>], iteration_bounds = array<i64: 1, 1, 1>, scalar_prefetch = 0 : i64, scratch_operands = 0 : i64, tpu.core_type = #tpu.core_type<tc>, window_params = [{transform_indices = @transform_0, window_bounds = array<i64: 1, 8, 32>}, {transform_indices = @transform_1, window_bounds = array<i64: 32, 128>}, {transform_indices = @transform_2, window_bounds = array<i64: 1, 1, 128>}, {transform_indices = @transform_3, window_bounds = array<i64: 1, 8, 128>}]} {
    %c0 = arith.constant 0 : index
    %c0_0 = arith.constant 0 : index
    %c0_1 = arith.constant 0 : index
    %0 = vector.load %arg3[%c0, %c0_0, %c0_1] : memref<1x8x32xbf16, #tpu.memory_space<vmem>>, vector<1x8x32xbf16>
    %1 = vector.shape_cast %0 : vector<1x8x32xbf16> to vector<8x32xbf16>
    %c0_2 = arith.constant 0 : index
    %c0_3 = arith.constant 0 : index
    %2 = vector.load %arg4[%c0_2, %c0_3] : memref<32x128xbf16, #tpu.memory_space<vmem>>, vector<32x128xbf16>
    %cst = arith.constant dense<0.000000e+00> : vector<8x128xf32>
    %3 = tpu.matmul %1, %2, %cst {dimension_numbers = #tpu.dot_dimension_numbers<[1], [0], [0], [1], [0, 0, 1, 1], [], []>} : vector<8x32xbf16>, vector<32x128xbf16>, vector<8x128xf32> -> vector<8x128xf32>
    %c0_4 = arith.constant 0 : index
    %c0_5 = arith.constant 0 : index
    %c0_6 = arith.constant 0 : index
    %4 = vector.load %arg5[%c0_4, %c0_5, %c0_6] : memref<1x1x128xf32, #tpu.memory_space<vmem>>, vector<1x1x128xf32>
    %5 = vector.shape_cast %4 : vector<1x1x128xf32> to vector<1x128xf32>
    %6 = vector.broadcast %5 : vector<1x128xf32> to vector<8x128xf32>
    %7 = arith.addf %3, %6 : vector<8x128xf32>
    %8 = vector.shape_cast %7 : vector<8x128xf32> to vector<1x8x128xf32>
    %c0_7 = arith.constant 0 : index
    %c0_8 = arith.constant 0 : index
    %c0_9 = arith.constant 0 : index
    %9 = vector.load %arg6[%c0_7, %c0_8, %c0_9] : memref<1x8x128xf32, #tpu.memory_space<vmem>>, vector<1x8x128xf32>
    tpu.vector_store %arg6[%c0_7, %c0_8, %c0_9], %8 {strides = array<i32>} : memref<1x8x128xf32, #tpu.memory_space<vmem>>, vector<1x8x128xf32>,
    return
  }
  func.func @transform_0(%arg0: i32, %arg1: i32, %arg2: i32) -> (i32, i32, i32) {
    %c0_i32 = arith.constant 0 : i32
    %c0_i32_0 = arith.constant 0 : i32
    return %arg0, %arg1, %c0_i32 : i32, i32, i32
  }
  func.func @transform_1(%arg0: i32, %arg1: i32, %arg2: i32) -> (i32, i32) {
    %c0_i32 = arith.constant 0 : i32
    %c0_i32_0 = arith.constant 0 : i32
    return %c0_i32, %arg2 : i32, i32
  }
  func.func @transform_2(%arg0: i32, %arg1: i32, %arg2: i32) -> (i32, i32, i32) {
    %c0_i32 = arith.constant 0 : i32
    %c0_i32_0 = arith.constant 0 : i32
    %c0_i32_1 = arith.constant 0 : i32
    return %c0_i32, %c0_i32_0, %arg2 : i32, i32, i32
  }
  func.func @transform_3(%arg0: i32, %arg1: i32, %arg2: i32) -> (i32, i32, i32) {
    %c0_i32 = arith.constant 0 : i32
    return %arg0, %arg1, %arg2 : i32, i32, i32
  }
}

</mosaic_0001>

<bundles_post_ra>
// kernel: _lambda_.15
= control target key start
LH: loop header
LB: loop body
LE: loop exit
PB: predicated region body
PF: predicated region fallthrough
CT: control target
= control target key end

     0   :  { %vm108_vm0 = vcmask 1044480   ;;  %vm109_vm1 = vcmask 1045504   ;;  %vm83_vm2 = vcmask 220160   ;;  %v454_v1 = vmov 65535   ;;  %s532_s1 = inlined_call_operand.vmem [shape: bf16[27,128], index: 1, kind: input, shape index: {}]   ;;  %s533_s0 = inlined_call_operand.vmem [shape: bf16[1,128,27], index: 0, kind: input, shape index: {}]   ;;  %s534_s2 = inlined_call_operand.vmem [shape: bf16[1,128,128], index: 2, kind: output, shape index: {}]  }
   0x1   :  { %v444_v0 = vld [vmem:[%s532_s1] sm:$0xff]   ;;  %v110_v2 = vsel %vm108_vm0, 4294967295, %v454_v1  ;;  %v445_v3 = vld [vmem:[%s532_s1 + $0x8] sm:$0x3f]   ;;  %v450_v10 = vld [vmem:[%s533_s0 + $0x10] sm:$0xff]  }
   0x2   :  { %419 = vmatprep.subr.bf16.mxu0 %v444_v0  ;;  %439 = vmatprep.subr.bf16.mxu1 %v444_v0  ;;  %v111_v4 = vsel %vm109_vm1, %v110_v2, 0  ;;  %v446_v5 = vld [vmem:[%s533_s0] sm:$0xff]   ;;  %v448_v8 = vld [vmem:[%s533_s0 + $0x8] sm:$0xff]   ;;  %v451_v11 = vld [vmem:[%s533_s0 + $0x30] sm:$0xff]  }
   0x3   :  { %420 = vmatpush3.bf16.msra.mxu0 %v444_v0  ;;  %441 = vmatpush3.bf16.msra.mxu1 %v444_v0  ;;  %v113_v6 = vand.u32 %v445_v3, %v111_v4  ;;  %v447_v7 = vld [vmem:[%s533_s0 + $0x20] sm:$0xff]   ;;  %v449_v9 = vld [vmem:[%s533_s0 + $0x28] sm:$0xff]   ;;  %v452_v12 = vld [vmem:[%s533_s0 + $0x18] sm:$0xff]  }
   0x4   :  { %423 = vmatprep.mubr.msk.bf16.mxu0 %vm83_vm2, %v446_v5  ;;  %431 = vmatprep.mubr.msk.bf16.mxu1 %vm83_vm2, %v447_v7  ;;  %v453_v13 = vld [vmem:[%s533_s0 + $0x38] sm:$0xff]  }
   0x5   :  { %421 = vmatprep.subr.bf16.mxu0 %v113_v6  ;;  %440 = vmatprep.subr.bf16.mxu1 %v113_v6 }
   0x7   :  { %422 = vmatpush3.bf16.msra.mxu0 %v113_v6  ;;  %442 = vmatpush3.bf16.msra.mxu1 %v113_v6 }
   0xa   :  { %424 = vmatmul.mubr.msk.bf16.vlgmr.msra.gmra.mrb[0].mxu0 %vm83_vm2, %v448_v8  ;;  %432 = vmatmul.mubr.msk.bf16.vlgmr.msra.gmra.mrb[0].mxu1 %vm83_vm2, %v449_v9 }
   0xb   :  { %427 = vmatprep.mubr.msk.bf16.mxu0 %vm83_vm2, %v450_v10  ;;  %435 = vmatprep.mubr.msk.bf16.mxu1 %vm83_vm2, %v451_v11 }
  0x12   :  { %428 = vmatmul.mubr.msk.bf16.gmra.mrb[4].mxu0 %vm83_vm2, %v452_v12  ;;  %436 = vmatmul.mubr.msk.bf16.gmra.mrb[4].mxu1 %vm83_vm2, %v453_v13 }
  0xdd   :  { %v425_v14 = vpop.f32.mrb[0].mxu0  ;;  %v433_v15 = vpop.f32.mrb[0].mxu1 }
  0xde   :  { %v149_v16 = vpop.f32.mrb[1].mxu0  ;;  %v181_v17 = vpop.f32.mrb[1].mxu1  ;;  %v214_v20 = vmax.f32 %v425_v14, 0.0  ;;  %v222_v21 = vmax.f32 %v433_v15, 0.0 }
  0xdf   :  { %v426_v18 = vpop.f32.mrb[2].mxu0  ;;  %v434_v19 = vpop.f32.mrb[2].mxu1  ;;  %v212_v26 = vmax.f32 %v149_v16, 0.0  ;;  %v220_v27 = vmax.f32 %v181_v17, 0.0 }
  0xe0   :  { %v215_v22 = vmax.f32 %v426_v18, 0.0  ;;  %v223_v23 = vmax.f32 %v434_v19, 0.0  ;;  %v152_v24 = vpop.f32.mrb[3].mxu0  ;;  %v184_v25 = vpop.f32.mrb[3].mxu1 }
  0xe1   :  { %v213_v28 = vmax.f32 %v152_v24, 0.0  ;;  %v221_v29 = vmax.f32 %v184_v25, 0.0 }
  0xe2   :  { %v370_v30 = vpack.c.bf16 %v215_v22, %v214_v20  ;;  %v390_v31 = vpack.c.bf16 %v223_v23, %v222_v21 }
  0xe3   :  { %v365_v32 = vpack.c.bf16 %v213_v28, %v212_v26  ;;  %v385_v33 = vpack.c.bf16 %v221_v29, %v220_v27 }
  0xe4   :  { %402 = vst [vmem:[%s534_s2 + $0x8] sm:$0xff] %v370_v30   ;;  %406 = vst [vmem:[%s534_s2 + $0x28] sm:$0xff] %v390_v31  }
  0xe5   :  { %366 = vst [vmem:[%s534_s2] sm:$0xff] %v365_v32   ;;  %405 = vst [vmem:[%s534_s2 + $0x20] sm:$0xff] %v385_v33   ;;  %v429_v34 = vpop.f32.mrb[4].mxu0  ;;  %v437_v35 = vpop.f32.mrb[4].mxu1 }
  0xe6   :  { %v165_v36 = vpop.f32.mrb[5].mxu0  ;;  %v197_v37 = vpop.f32.mrb[5].mxu1  ;;  %v218_v40 = vmax.f32 %v429_v34, 0.0  ;;  %v226_v41 = vmax.f32 %v437_v35, 0.0 }
  0xe7   :  { %v430_v38 = vpop.f32.mrb[6].mxu0  ;;  %v438_v39 = vpop.f32.mrb[6].mxu1  ;;  %v216_v46 = vmax.f32 %v165_v36, 0.0  ;;  %v224_v47 = vmax.f32 %v197_v37, 0.0 }
  0xe8   :  { %v219_v42 = vmax.f32 %v430_v38, 0.0  ;;  %v227_v43 = vmax.f32 %v438_v39, 0.0  ;;  %v168_v44 = vpop.f32.mrb[7].mxu0  ;;  %v200_v45 = vpop.f32.mrb[7].mxu1 }
  0xe9   :  { %v217_v48 = vmax.f32 %v168_v44, 0.0  ;;  %v225_v49 = vmax.f32 %v200_v45, 0.0 }
  0xea   :  { %v380_v50 = vpack.c.bf16 %v219_v42, %v218_v40  ;;  %v400_v51 = vpack.c.bf16 %v227_v43, %v226_v41 }
  0xeb   :  { %v375_v52 = vpack.c.bf16 %v217_v48, %v216_v46  ;;  %v395_v53 = vpack.c.bf16 %v225_v49, %v224_v47 }
  0xec   :  { %404 = vst [vmem:[%s534_s2 + $0x18] sm:$0xff] %v380_v50   ;;  %408 = vst [vmem:[%s534_s2 + $0x38] sm:$0xff] %v400_v51  }
  0xed   :  { %403 = vst [vmem:[%s534_s2 + $0x10] sm:$0xff] %v375_v52   ;;  %407 = vst [vmem:[%s534_s2 + $0x30] sm:$0xff] %v395_v53  }

// kernel: _lambda_.17
= control target key start
LH: loop header
LB: loop body
LE: loop exit
PB: predicated region body
PF: predicated region fallthrough
CT: control target
= control target key end

     0   :  { %vm94_vm0 = vcmask 1043456   ;;  %vm69_vm1 = vcmask 64512   ;;  %s503_s1 = inlined_call_operand.vmem [shape: bf16[8,128], index: 1, kind: input, shape index: {}]   ;;  %s504_s0 = inlined_call_operand.vmem [shape: bf16[1,128,8], index: 0, kind: input, shape index: {}]   ;;  %s505_s2 = inlined_call_operand.vmem [shape: bf16[1,128,128], index: 2, kind: output, shape index: {}]  }
   0x1   :  { %v28_v0 = vld [vmem:[%s503_s1] sm:$0xf]  ;;  %v423_v4 = vld [vmem:[%s504_s0 + $0x8] sm:$0xff]   ;;  %v425_v6 = vld [vmem:[%s504_s0 + $0x10] sm:$0xff]  }
   0x2   :  { %419 = vmatprep.subr.msk.bf16.mxu0 %vm94_vm0, %v28_v0  ;;  %420 = vmatprep.subr.msk.bf16.mxu1 %vm94_vm0, %v28_v0  ;;  %v96_v1 = vsel %vm94_vm0, %v28_v0, 0  ;;  %v421_v2 = vld [vmem:[%s504_s0] sm:$0xff]   ;;  %v424_v5 = vld [vmem:[%s504_s0 + $0x28] sm:$0xff]   ;;  %v426_v7 = vld [vmem:[%s504_s0 + $0x30] sm:$0xff]  }
   0x3   :  { %400 = vmatpush3.bf16.msra.mxu0 %v96_v1  ;;  %418 = vmatpush3.bf16.msra.mxu1 %v96_v1  ;;  %v422_v3 = vld [vmem:[%s504_s0 + $0x20] sm:$0xff]   ;;  %v427_v8 = vld [vmem:[%s504_s0 + $0x18] sm:$0xff]  }
   0x4   :  { %401 = vmatprep.mubr.msk.bf16.mxu0 %vm69_vm1, %v421_v2  ;;  %409 = vmatprep.mubr.msk.bf16.mxu1 %vm69_vm1, %v422_v3  ;;  %v428_v9 = vld [vmem:[%s504_s0 + $0x38] sm:$0xff]  }
   0x6   :  { %402 = vmatmul.mubr.msk.bf16.vlgmr.msra.gmra.mrb[0].mxu0 %vm69_vm1, %v423_v4  ;;  %410 = vmatmul.mubr.msk.bf16.vlgmr.msra.gmra.mrb[0].mxu1 %vm69_vm1, %v424_v5 }
   0x7   :  { %405 = vmatprep.mubr.msk.bf16.mxu0 %vm69_vm1, %v425_v6  ;;  %413 = vmatprep.mubr.msk.bf16.mxu1 %vm69_vm1, %v426_v7 }
   0xe   :  { %406 = vmatmul.mubr.msk.bf16.gmra.mrb[4].mxu0 %vm69_vm1, %v427_v8  ;;  %414 = vmatmul.mubr.msk.bf16.gmra.mrb[4].mxu1 %vm69_vm1, %v428_v9 }
  0xd9   :  { %v403_v10 = vpop.f32.mrb[0].mxu0  ;;  %v411_v11 = vpop.f32.mrb[0].mxu1 }
  0xda   :  { %v132_v12 = vpop.f32.mrb[1].mxu0  ;;  %v164_v13 = vpop.f32.mrb[1].mxu1  ;;  %v197_v15 = vmax.f32 %v403_v10, 0.0  ;;  %v205_v19 = vmax.f32 %v411_v11, 0.0 }
  0xdb   :  { %v404_v14 = vpop.f32.mrb[2].mxu0  ;;  %v412_v17 = vpop.f32.mrb[2].mxu1  ;;  %v195_v20 = vmax.f32 %v132_v12, 0.0  ;;  %v203_v24 = vmax.f32 %v164_v13, 0.0 }
  0xdc   :  { %v198_v16 = vmax.f32 %v404_v14, 0.0  ;;  %v135_v18 = vpop.f32.mrb[3].mxu0  ;;  %v206_v21 = vmax.f32 %v412_v17, 0.0  ;;  %v167_v23 = vpop.f32.mrb[3].mxu1 }
  0xdd   :  { %v196_v22 = vmax.f32 %v135_v18, 0.0  ;;  %v204_v26 = vmax.f32 %v167_v23, 0.0 }
  0xde   :  { %v351_v25 = vpack.c.bf16 %v198_v16, %v197_v15  ;;  %v371_v27 = vpack.c.bf16 %v206_v21, %v205_v19 }
  0xdf   :  { %v346_v28 = vpack.c.bf16 %v196_v22, %v195_v20  ;;  %v366_v29 = vpack.c.bf16 %v204_v26, %v203_v24 }
  0xe0   :  { %383 = vst [vmem:[%s505_s2 + $0x8] sm:$0xff] %v351_v25   ;;  %387 = vst [vmem:[%s505_s2 + $0x28] sm:$0xff] %v371_v27  }
  0xe1   :  { %347 = vst [vmem:[%s505_s2] sm:$0xff] %v346_v28   ;;  %v407_v30 = vpop.f32.mrb[4].mxu0  ;;  %386 = vst [vmem:[%s505_s2 + $0x20] sm:$0xff] %v366_v29   ;;  %v415_v31 = vpop.f32.mrb[4].mxu1 }
  0xe2   :  { %v148_v32 = vpop.f32.mrb[5].mxu0  ;;  %v180_v33 = vpop.f32.mrb[5].mxu1  ;;  %v201_v35 = vmax.f32 %v407_v30, 0.0  ;;  %v209_v39 = vmax.f32 %v415_v31, 0.0 }
  0xe3   :  { %v408_v34 = vpop.f32.mrb[6].mxu0  ;;  %v416_v37 = vpop.f32.mrb[6].mxu1  ;;  %v199_v40 = vmax.f32 %v148_v32, 0.0  ;;  %v207_v44 = vmax.f32 %v180_v33, 0.0 }
  0xe4   :  { %v202_v36 = vmax.f32 %v408_v34, 0.0  ;;  %v151_v38 = vpop.f32.mrb[7].mxu0  ;;  %v210_v41 = vmax.f32 %v416_v37, 0.0  ;;  %v183_v43 = vpop.f32.mrb[7].mxu1 }
  0xe5   :  { %v200_v42 = vmax.f32 %v151_v38, 0.0  ;;  %v208_v46 = vmax.f32 %v183_v43, 0.0 }
  0xe6   :  { %v361_v45 = vpack.c.bf16 %v202_v36, %v201_v35  ;;  %v381_v47 = vpack.c.bf16 %v210_v41, %v209_v39 }
  0xe7   :  { %v356_v48 = vpack.c.bf16 %v200_v42, %v199_v40  ;;  %v376_v49 = vpack.c.bf16 %v208_v46, %v207_v44 }
  0xe8   :  { %385 = vst [vmem:[%s505_s2 + $0x18] sm:$0xff] %v361_v45   ;;  %389 = vst [vmem:[%s505_s2 + $0x38] sm:$0xff] %v381_v47  }
  0xe9   :  { %384 = vst [vmem:[%s505_s2 + $0x10] sm:$0xff] %v356_v48   ;;  %388 = vst [vmem:[%s505_s2 + $0x30] sm:$0xff] %v376_v49  }

// kernel: _lambda_.18
= control target key start
LH: loop header
LB: loop body
LE: loop exit
PB: predicated region body
PF: predicated region fallthrough
CT: control target
= control target key end

     0   :  { %v258_v0 = vmov 0   ;;  %vm106_vm0 = vcmask 130048   ;;  %s319_s1 = inlined_call_operand.vmem [shape: bf16[144,128], index: 1, kind: input, shape index: {}]   ;;  %s320_s0 = inlined_call_operand.vmem [shape: bf16[1,32,144], index: 0, kind: input, shape index: {}]   ;;  %s321_s2 = inlined_call_operand.vmem [shape: bf16[1,32,128], index: 2, kind: output, shape index: {}]  }
   0x1   :  { %113 = vmatprep.subr.bf16.mxu0 %v258_v0  ;;  %224 = vmatprep.subr.bf16.mxu1 %v258_v0  ;;  %v243_v1 = vld [vmem:[%s319_s1] sm:$0xff]   ;;  %v244_v2 = vld [vmem:[%s319_s1 + $0x8] sm:$0xff]   ;;  %v245_v3 = vld [vmem:[%s319_s1 + $0x10] sm:$0xff]  }
   0x2   :  { %114 = vmatpush1.bf16.msra.mxu0 %v243_v1  ;;  %233 = vmatpush1.bf16.msra.mxu1 %v243_v1  ;;  %v246_v4 = vld [vmem:[%s319_s1 + $0x18] sm:$0xff]   ;;  %v254_v5 = vld [vmem:[%s320_s0 + $0x4] ss:$8 sps:$4 sm:$0xff]   ;;  %v249_v9 = vld [vmem:[%s319_s1 + $0x30] sm:$0xff]  }
   0x3   :  { %115 = vmatprep.subr.bf16.mxu0 %v258_v0  ;;  %225 = vmatprep.subr.bf16.mxu1 %v258_v0  ;;  %v257_v6 = vld [vmem:[%s320_s0 + $0x14] ss:$8 sps:$4 sm:$0xff]   ;;  %v247_v7 = vld [vmem:[%s319_s1 + $0x20] sm:$0xff]   ;;  %v248_v8 = vld [vmem:[%s319_s1 + $0x28] sm:$0xff]  }
   0x4   :  { %203 = vmatprep.mubr.msk.bf16.mxu0 %vm106_vm0, %v254_v5  ;;  %204 = vmatprep.mubr.msk.bf16.mxu1 %vm106_vm0, %v257_v6  ;;  %v250_v10 = vld [vmem:[%s319_s1 + $0x38] sm:$0xff]   ;;  %v251_v11 = vld [vmem:[%s319_s1 + $0x40] sm:$0xff]  }
   0x5   :  { %v252_v12 = vld [vmem:[%s320_s0] ss:$8 sps:$4 sm:$0xff]   ;;  %v255_v13 = vld [vmem:[%s320_s0 + $0x10] ss:$8 sps:$4 sm:$0xff]  }
   0x6   :  { %116 = vmatpush1.bf16.msra.mxu0 %v244_v2  ;;  %234 = vmatpush1.bf16.msra.mxu1 %v244_v2 }
   0x7   :  { %117 = vmatprep.subr.bf16.mxu0 %v258_v0  ;;  %226 = vmatprep.subr.bf16.mxu1 %v258_v0 }
   0xa   :  { %118 = vmatpush1.bf16.msra.mxu0 %v245_v3  ;;  %235 = vmatpush1.bf16.msra.mxu1 %v245_v3 }
   0xb   :  { %119 = vmatprep.subr.bf16.mxu0 %v258_v0  ;;  %227 = vmatprep.subr.bf16.mxu1 %v258_v0 }
   0xe   :  { %120 = vmatpush1.bf16.msra.mxu0 %v246_v4  ;;  %236 = vmatpush1.bf16.msra.mxu1 %v246_v4 }
   0xf   :  { %121 = vmatprep.subr.bf16.mxu0 %v258_v0  ;;  %228 = vmatprep.subr.bf16.mxu1 %v258_v0 }
  0x12   :  { %122 = vmatpush1.bf16.msra.mxu0 %v247_v7  ;;  %237 = vmatpush1.bf16.msra.mxu1 %v247_v7 }
  0x13   :  { %123 = vmatprep.subr.bf16.mxu0 %v258_v0  ;;  %229 = vmatprep.subr.bf16.mxu1 %v258_v0 }
  0x16   :  { %124 = vmatpush1.bf16.msra.mxu0 %v248_v8  ;;  %238 = vmatpush1.bf16.msra.mxu1 %v248_v8 }
  0x17   :  { %125 = vmatprep.subr.bf16.mxu0 %v258_v0  ;;  %230 = vmatprep.subr.bf16.mxu1 %v258_v0 }
  0x1a   :  { %126 = vmatpush1.bf16.msra.mxu0 %v249_v9  ;;  %239 = vmatpush1.bf16.msra.mxu1 %v249_v9 }
  0x1b   :  { %127 = vmatprep.subr.bf16.mxu0 %v258_v0  ;;  %231 = vmatprep.subr.bf16.mxu1 %v258_v0 }
  0x1e   :  { %128 = vmatpush1.bf16.msra.mxu0 %v250_v10  ;;  %240 = vmatpush1.bf16.msra.mxu1 %v250_v10 }
  0x1f   :  { %129 = vmatprep.subr.bf16.mxu0 %v258_v0  ;;  %232 = vmatprep.subr.bf16.mxu1 %v258_v0 }
  0x22   :  { %130 = vmatpush1.bf16.msra.mxu0 %v251_v11  ;;  %241 = vmatpush1.bf16.msra.mxu1 %v251_v11 }
  0x25   :  { %146 = vmatmul.mubr.bf16.vlgmr.msra.gmra.mrb[0].mxu0 %v252_v12  ;;  %154 = vmatmul.mubr.bf16.vlgmr.msra.gmra.mrb[0].mxu1 %v255_v13 }
  0xf8   :  { %v147_v14 = vpop.f32.mrb[0].mxu0  ;;  %v155_v15 = vpop.f32.mrb[0].mxu1 }
  0xf9   :  { %v149_v16 = vpop.f32.mrb[1].mxu0  ;;  %v157_v17 = vpop.f32.mrb[1].mxu1  ;;  %v162_v20 = vmax.f32 %v147_v14, 0.0  ;;  %v164_v21 = vmax.f32 %v155_v15, 0.0 }
  0xfa   :  { %v150_v18 = vpop.f32.mrb[2].mxu0  ;;  %v158_v19 = vpop.f32.mrb[2].mxu1 }
  0xfb   :  { %v163_v22 = vmax.f32 %v150_v18, 0.0  ;;  %v165_v23 = vmax.f32 %v158_v19, 0.0  ;;  %v152_v24 = vpop.f32.mrb[3].mxu0  ;;  %v160_v25 = vpop.f32.mrb[3].mxu1 }
  0xfd   :  { %v216_v26 = vpack.c.bf16 %v163_v22, %v162_v20  ;;  %v221_v27 = vpack.c.bf16 %v165_v23, %v164_v21 }
  0xff   :  { %217 = vst [vmem:[%s321_s2] sm:$0xff] %v216_v26   ;;  %223 = vst [vmem:[%s321_s2 + $0x8] sm:$0xff] %v221_v27  }

// kernel: _lambda_.20
= control target key start
LH: loop header
LB: loop body
LE: loop exit
PB: predicated region body
PF: predicated region fallthrough
CT: control target
= control target key end

     0   :  { %v382_v0 = vmov 0.0|0.0   ;;  %vm383_vm0 = vmmov 0   ;;  %v384_v4 = vmov 0.0   ;;  %s539_s1 = inlined_call_operand.vmem [shape: f32[128,128], index: 1, kind: input, shape index: {}]   ;;  %s540_s3 = inlined_call_operand.vmem [shape: f32[128,128], index: 3, kind: input, shape index: {}]   ;;  %s541_s0 = inlined_call_operand.vmem [shape: f32[2,128], index: 0, kind: input, shape index: {}]   ;;  %s542_s2 = inlined_call_operand.vmem [shape: f32[1,128], index: 2, kind: input, shape index: {}, may-alias: {2,4}]   ;;  %s543_s4 = inlined_call_operand.vmem [shape: f32[1,128], index: 4, kind: input, shape index: {}, may-alias: {2,4}]   ;;  %s544_s5 = inlined_call_operand.vmem [shape: bf16[2,128], index: 5, kind: output, shape index: {}]  }
   0x1   :  { %327 = vmatprep.subr.bf16.mxu0 %v382_v0  ;;  %v21_v1 = vld [vmem:[%s539_s1] sm:$0xff]  ;;  %v22_v2 = vld [vmem:[%s539_s1 + $0x8] sm:$0xff]  ;;  %v23_v3 = vld [vmem:[%s539_s1 + $0x10] sm:$0xff]  ;;  %289 = vmatprep.mubr.msk.f32.mxu0 %vm383_vm0, %v384_v4 }
   0x2   :  { %v328_v5 = vpack.c.bf16 %v22_v2, %v21_v1  ;;  %v24_v6 = vld [vmem:[%s539_s1 + $0x18] sm:$0xff]  ;;  %351 = vmatprep.subr.bf16.mxu1 %v382_v0  ;;  %324 = vmatprep.mubr.msk.f32.mxu1 %vm383_vm0, %v384_v4  ;;  %v25_v8 = vld [vmem:[%s539_s1 + $0x20] sm:$0xff]  ;;  %v26_v9 = vld [vmem:[%s539_s1 + $0x28] sm:$0xff] }
   0x3   :  { %v331_v7 = vpack.c.bf16 %v24_v6, %v23_v3  ;;  %v115_v10 = vld [vmem:[%s540_s3] sm:$0xff]  ;;  %v116_v11 = vld [vmem:[%s540_s3 + $0x8] sm:$0xff]  ;;  %v117_v12 = vld [vmem:[%s540_s3 + $0x10] sm:$0xff]  ;;  %v334_v14 = vpack.c.bf16 %v26_v9, %v25_v8 }
   0x4   :  { %329 = vmatpush3.bf16.msra.mxu0 %v328_v5  ;;  %v118_v13 = vld [vmem:[%s540_s3 + $0x18] sm:$0xff]  ;;  %v352_v15 = vpack.c.bf16 %v116_v11, %v115_v10  ;;  %v27_v16 = vld [vmem:[%s539_s1 + $0x30] sm:$0xff]  ;;  %v119_v19 = vld [vmem:[%s540_s3 + $0x20] sm:$0xff] }
   0x5   :  { %330 = vmatprep.subr.bf16.mxu0 %v382_v0  ;;  %v28_v17 = vld [vmem:[%s539_s1 + $0x38] sm:$0xff]  ;;  %v355_v18 = vpack.c.bf16 %v118_v13, %v117_v12  ;;  %v120_v20 = vld [vmem:[%s540_s3 + $0x28] sm:$0xff]  ;;  %v29_v22 = vld [vmem:[%s539_s1 + $0x40] sm:$0xff] }
   0x6   :  { %353 = vmatpush3.bf16.msra.mxu1 %v352_v15  ;;  %v337_v21 = vpack.c.bf16 %v28_v17, %v27_v16  ;;  %v30_v23 = vld [vmem:[%s539_s1 + $0x48] sm:$0xff]  ;;  %v358_v24 = vpack.c.bf16 %v120_v20, %v119_v19  ;;  %v121_v25 = vld [vmem:[%s540_s3 + $0x30] sm:$0xff]  ;;  %v122_v26 = vld [vmem:[%s540_s3 + $0x38] sm:$0xff] }
   0x7   :  { %354 = vmatprep.subr.bf16.mxu1 %v382_v0  ;;  %v340_v27 = vpack.c.bf16 %v30_v23, %v29_v22  ;;  %v31_v28 = vld [vmem:[%s539_s1 + $0x50] sm:$0xff]  ;;  %v32_v29 = vld [vmem:[%s539_s1 + $0x58] sm:$0xff]  ;;  %v361_v30 = vpack.c.bf16 %v122_v26, %v121_v25  ;;  %v123_v31 = vld [vmem:[%s540_s3 + $0x40] sm:$0xff] }
   0x8   :  { %332 = vmatpush3.bf16.msra.mxu0 %v331_v7  ;;  %v124_v32 = vld [vmem:[%s540_s3 + $0x48] sm:$0xff]  ;;  %v343_v33 = vpack.c.bf16 %v32_v29, %v31_v28  ;;  %v33_v34 = vld [vmem:[%s539_s1 + $0x60] sm:$0xff]  ;;  %v125_v37 = vld [vmem:[%s540_s3 + $0x50] sm:$0xff] }
   0x9   :  { %333 = vmatprep.subr.bf16.mxu0 %v382_v0  ;;  %v34_v35 = vld [vmem:[%s539_s1 + $0x68] sm:$0xff]  ;;  %v364_v36 = vpack.c.bf16 %v124_v32, %v123_v31  ;;  %v126_v38 = vld [vmem:[%s540_s3 + $0x58] sm:$0xff]  ;;  %v35_v40 = vld [vmem:[%s539_s1 + $0x70] sm:$0xff] }
   0xa   :  { %356 = vmatpush3.bf16.msra.mxu1 %v355_v18  ;;  %v346_v39 = vpack.c.bf16 %v34_v35, %v33_v34  ;;  %v36_v41 = vld [vmem:[%s539_s1 + $0x78] sm:$0xff]  ;;  %v367_v42 = vpack.c.bf16 %v126_v38, %v125_v37  ;;  %v127_v43 = vld [vmem:[%s540_s3 + $0x60] sm:$0xff]  ;;  %v128_v44 = vld [vmem:[%s540_s3 + $0x68] sm:$0xff] }
   0xb   :  { %357 = vmatprep.subr.bf16.mxu1 %v382_v0  ;;  %v349_v45 = vpack.c.bf16 %v36_v41, %v35_v40  ;;  %v370_v46 = vpack.c.bf16 %v128_v44, %v127_v43  ;;  %v20_v47 = vld [vmem:[%s541_s0] sm:$0x3]  ;;  %v129_v48 = vld [vmem:[%s540_s3 + $0x70] sm:$0xff]  ;;  %v130_v49 = vld [vmem:[%s540_s3 + $0x78] sm:$0xff] }
   0xc   :  { %335 = vmatpush3.bf16.msra.mxu0 %v334_v14  ;;  %v373_v50 = vpack.c.bf16 %v130_v49, %v129_v48  ;;  %v220_v51 = vld [vmem:[%s542_s2] ss:$0 sm:$0xff] }
   0xd   :  { %336 = vmatprep.subr.bf16.mxu0 %v382_v0  ;;  %v221_v56 = vld [vmem:[%s543_s4] ss:$0 sm:$0xff] }
   0xe   :  { %359 = vmatpush3.bf16.msra.mxu1 %v358_v24 }
   0xf   :  { %360 = vmatprep.subr.bf16.mxu1 %v382_v0 }
  0x10   :  { %338 = vmatpush3.bf16.msra.mxu0 %v337_v21 }
  0x11   :  { %339 = vmatprep.subr.bf16.mxu0 %v382_v0 }
  0x12   :  { %362 = vmatpush3.bf16.msra.mxu1 %v361_v30 }
  0x13   :  { %363 = vmatprep.subr.bf16.mxu1 %v382_v0 }
  0x14   :  { %341 = vmatpush3.bf16.msra.mxu0 %v340_v27 }
  0x15   :  { %342 = vmatprep.subr.bf16.mxu0 %v382_v0 }
  0x16   :  { %365 = vmatpush3.bf16.msra.mxu1 %v364_v36 }
  0x17   :  { %366 = vmatprep.subr.bf16.mxu1 %v382_v0 }
  0x18   :  { %344 = vmatpush3.bf16.msra.mxu0 %v343_v33 }
  0x19   :  { %345 = vmatprep.subr.bf16.mxu0 %v382_v0 }
  0x1a   :  { %368 = vmatpush3.bf16.msra.mxu1 %v367_v42 }
  0x1b   :  { %369 = vmatprep.subr.bf16.mxu1 %v382_v0 }
  0x1c   :  { %347 = vmatpush3.bf16.msra.mxu0 %v346_v39 }
  0x1d   :  { %348 = vmatprep.subr.bf16.mxu0 %v382_v0 }
  0x1e   :  { %371 = vmatpush3.bf16.msra.mxu1 %v370_v46 }
  0x1f   :  { %372 = vmatprep.subr.bf16.mxu1 %v382_v0 }
  0x20   :  { %350 = vmatpush3.bf16.msra.mxu0 %v349_v45 }
  0x22   :  { %374 = vmatpush3.bf16.msra.mxu1 %v373_v50 }
  0x23   :  { %290 = vmatmul.mubr.f32.vlgmr.msra.gmra.mrb[0].mxu0 %v20_v47 }
  0xf6   :  { %v110_v52 = vpop.f32.mrb[0].mxu0 }
  0xf7   :  { %v111_v53 = vadd.f32 %v220_v51, %v110_v52  ;;  %v291_v54 = vpop.f32.mrb[1].mxu0 }
  0xf9   :  { %v114_v55 = vmax.f32 %v111_v53, 0.0 }
  0xfb   :  { %325 = vmatmul.mubr.f32.vlgmr.msra.gmra.mrb[0].mxu1 %v114_v55 }
 0x1ce   :  { %v204_v57 = vpop.f32.mrb[0].mxu1 }
 0x1cf   :  { %v205_v58 = vadd.f32 %v221_v56, %v204_v57  ;;  %v326_v59 = vpop.f32.mrb[1].mxu1 }
 0x1d1   :  { %v222_v60 = vmul.f32 -1.442695, %v205_v58 }
 0x1d3   :  { %378 = vpow2.f32 %v222_v60 }
 0x1dd   :  { %v379_v61 = vpop.eup %378 }
 0x1de   :  { %v211_v62 = vadd.f32 1.0, %v379_v61 }
 0x1e0   :  { %380 = vrcp.f32 %v211_v62 }
 0x1ea   :  { %v381_v63 = vpop.eup %380 }
 0x1eb   :  { %v214_v0 = vpack.c.bf16 %v381_v63, %v381_v63 }
 0x1ed   :  { %215 = vst [vmem:[%s544_s5] sm:$0x1] %v214_v0 }

// kernel: _lambda_.19
= control target key start
LH: loop header
LB: loop body
LE: loop exit
PB: predicated region body
PF: predicated region fallthrough
CT: control target
= control target key end

     0   :  { %s301_s6 = smov 0   ;;  %s303_s7 = smov 0   ;;  %s334_s0 = inlined_call_operand.vmem [shape: bf16[2,16,128], index: 0, kind: input, shape index: {}]   ;;  %s335_s1 = inlined_call_operand.vmem [shape: f32[2,1,128], index: 1, kind: output, shape index: {}]  }
   0x1   :  { %s305_s8 = smov 0  }
   0x2 LB: > { %s23_s9 = sadd.s32 1, %s284_s7  ;;  %p231_p0 = scmp.ge.s32.totalorder %s288_s8, 1  ;;  %s288_s8 = sphi %s305_s8, %s11_s8   ;;  %s284_s7 = sphi %s303_s7, %s337_s7   ;;  %s280_s6 = sphi %s301_s6, %s336_s6  }
   0x3   : > { %p25_p1 = scmp.ge.s32.totalorder %s23_s9, 2  ;;  %p106_p2 = scmp.lt.s32.totalorder %s288_s8, 3 }
   0x5   : > { %s339_s9 = smov (%p25_p1, %s23_s9), 0  ;;  %p107_p3 = pnand %p231_p0, %p106_p2 }
   0x6   : > { %p129_p4 = scmp.lt.s32.totalorder (!%p107_p3), %s280_s6, 1  ;;  %v290_v0 = vmov (!%p107_p3), 0.0  }
   0x7   : > { %110 = sbr.rel (%p107_p3) target bundleno = 47 (0x2f), region = 24 }
   0xe   : > { %s341_s6 = smov (!%p129_p4, %s280_s6), 1 }
   0xf   : > { %s236_s10 = sshll.u32 %s341_s6, 3  ;;  %s140_s13 = scalar_lea.vmem %s335_s1, %s341_s6 }
  0x10   : > { %s136_s16 = scalar_lea.vmem %s334_s0, %s236_s10  ;;  %145 = vst [vmem:[%s140_s13] sm:$0x1] %v290_v0 }
  0x11   : > { %v238_v1 = vld [vmem:[%s136_s16] sm:$0xff]  }
  0x12   : > { %v239_v2 = vunpack.c.l.bf16 %v238_v1  ;;  %v240_v3 = vunpack.c.h.bf16 %v238_v1 }
  0x14   : > { %v151_v4 = vadd.f32 %v240_v3, %v239_v2 }
  0x16   : > { %v152_v5 = vrot.slane %v151_v4, 4 }
  0x17   : > { %v146_v10 = vld [vmem:[%s140_s13] sm:$0x1] }
  0x18   : > { %v153_v6 = vadd.f32 %v152_v5, %v151_v4 }
  0x1a   : > { %v154_v7 = vrot.slane %v153_v6, 2 }
  0x1c   : > { %v155_v8 = vadd.f32 %v154_v7, %v153_v6 }
  0x1e   : > { %v156_v9 = vrot.slane %v155_v8, 1 }
  0x20   : > { %v157_v11 = vadd.f32 %v156_v9, %v155_v8 }
  0x22   : > { %v158_v12 = vadd.f32 %v157_v11, %v146_v10 }
  0x24   : > { %159 = vst [vmem:[%s140_s13] sm:$0x1] %v158_v12 }
  0x2b   : > { %v163_v13 = vld [vmem:[%s140_s13] sm:$0x1] }
  0x2c   : > { %v164_v14 = vmul.f32 0.0625, %v163_v13 }
  0x2e   : > { %165 = vst [vmem:[%s140_s13] sm:$0x1] %v164_v14 }
  0x2f PF: > { %s11_s8 = sadd.s32 1, %s288_s8   ;;  %s336_s6 = smov %s284_s7 }
  0x30   : > { %p8_p5 = scmp.ge.s32.totalorder %s11_s8, 4   ;;  %s337_s7 = smov %s339_s9 }
  0x32   :  { %10 = sbr.rel (!%p8_p5) target bundleno = 2 (0x2), region = 62 }

// kernel: _lambda_.16
= control target key start
LH: loop header
LB: loop body
LE: loop exit
PB: predicated region body
PF: predicated region fallthrough
CT: control target
= control target key end

     0   :  { %vm34_vm0 = vcmask 1043456   ;;  %vm27_vm1 = vcmask 64512   ;;  %s176_s1 = inlined_call_operand.vmem [shape: bf16[8,128], index: 1, kind: input, shape index: {}]   ;;  %s177_s0 = inlined_call_operand.vmem [shape: bf16[1,32,8], index: 0, kind: input, shape index: {}]   ;;  %s178_s2 = inlined_call_operand.vmem [shape: bf16[1,32,128], index: 2, kind: output, shape index: {}]  }
   0x1   :  { %v16_v0 = vld [vmem:[%s176_s1] sm:$0xf]  ;;  %v145_v3 = vld [vmem:[%s177_s0 + $0x8] sm:$0xff]  }
   0x2   :  { %143 = vmatprep.subr.msk.bf16.mxu0 %vm34_vm0, %v16_v0  ;;  %v36_v1 = vsel %vm34_vm0, %v16_v0, 0  ;;  %v144_v2 = vld [vmem:[%s177_s0] sm:$0xff]  }
   0x3   :  { %138 = vmatpush3.bf16.msra.mxu0 %v36_v1  ;;  %139 = vmatprep.mubr.msk.bf16.mxu0 %vm27_vm1, %v144_v2 }
   0x6   :  { %140 = vmatmul.mubr.msk.bf16.vlgmr.msra.gmra.mrb[0].mxu0 %vm27_vm1, %v145_v3 }
  0xd9   :  { %v141_v4 = vpop.f32.mrb[0].mxu0 }
  0xda   :  { %v72_v5 = vpop.f32.mrb[1].mxu0 }
  0xdb   :  { %v142_v6 = vpop.f32.mrb[2].mxu0 }
  0xdc   :  { %v131_v7 = vpack.c.bf16 %v142_v6, %v141_v4  ;;  %v75_v8 = vpop.f32.mrb[3].mxu0 }
  0xdd   :  { %v126_v9 = vpack.c.bf16 %v75_v8, %v72_v5 }
  0xde   :  { %133 = vst [vmem:[%s178_s2 + $0x8] sm:$0xff] %v131_v7  }
  0xdf   :  { %127 = vst [vmem:[%s178_s2] sm:$0xff] %v126_v9  }

// kernel: _lambda_.23
= control target key start
LH: loop header
LB: loop body
LE: loop exit
PB: predicated region body
PF: predicated region fallthrough
CT: control target
= control target key end

     0   :  { %vm34_vm0 = vcmask 130048   ;;  %s184_s1 = inlined_call_operand.vmem [shape: bf16[16,128], index: 1, kind: input, shape index: {}]   ;;  %s185_s0 = inlined_call_operand.vmem [shape: bf16[1,32,16], index: 0, kind: input, shape index: {}]   ;;  %s186_s2 = inlined_call_operand.vmem [shape: bf16[1,32,128], index: 2, kind: output, shape index: {}]  }
   0x1   :  { %v151_v0 = vld [vmem:[%s184_s1] sm:$0xff]   ;;  %v153_v2 = vld [vmem:[%s185_s0 + $0x8] sm:$0xff]  }
   0x2   :  { %v152_v1 = vld [vmem:[%s185_s0] sm:$0xff]   ;;  %145 = vmatprep.subr.bf16.mxu0 %v151_v0 }
   0x3   :  { %146 = vmatpush3.bf16.msra.mxu0 %v151_v0  ;;  %147 = vmatprep.mubr.msk.bf16.mxu0 %vm34_vm0, %v152_v1 }
   0x6   :  { %148 = vmatmul.mubr.msk.bf16.vlgmr.msra.gmra.mrb[0].mxu0 %vm34_vm0, %v153_v2 }
  0xd9   :  { %v149_v3 = vpop.f32.mrb[0].mxu0 }
  0xda   :  { %v75_v4 = vpop.f32.mrb[1].mxu0  ;;  %v92_v6 = vmax.f32 %v149_v3, 0.0 }
  0xdb   :  { %v150_v5 = vpop.f32.mrb[2].mxu0  ;;  %v90_v9 = vmax.f32 %v75_v4, 0.0 }
  0xdc   :  { %v93_v7 = vmax.f32 %v150_v5, 0.0  ;;  %v78_v8 = vpop.f32.mrb[3].mxu0 }
  0xdd   :  { %v91_v10 = vmax.f32 %v78_v8, 0.0 }
  0xde   :  { %v139_v11 = vpack.c.bf16 %v93_v7, %v92_v6 }
  0xdf   :  { %v134_v12 = vpack.c.bf16 %v91_v10, %v90_v9 }
  0xe0   :  { %141 = vst [vmem:[%s186_s2 + $0x8] sm:$0xff] %v139_v11  }
  0xe1   :  { %135 = vst [vmem:[%s186_s2] sm:$0xff] %v134_v12  }

// kernel: _lambda_.21
= control target key start
LH: loop header
LB: loop body
LE: loop exit
PB: predicated region body
PF: predicated region fallthrough
CT: control target
= control target key end

     0   :  { %s686_s15 = smov 0   ;;  %s688_s16 = smov 0   ;;  %s733_s0 = inlined_call_operand.vmem [shape: bf16[2,16,16], index: 0, kind: input, shape index: {}]   ;;  %s734_s1 = inlined_call_operand.vmem [shape: bf16[16,128], index: 1, kind: input, shape index: {}]   ;;  %s735_s2 = inlined_call_operand.vmem [shape: bf16[2,1,16], index: 2, kind: input, shape index: {}]   ;;  %s736_s3 = inlined_call_operand.vmem [shape: bf16[2,16,128], index: 3, kind: input, shape index: {}]   ;;  %s737_s4 = inlined_call_operand.vmem [shape: bf16[2,16,128], index: 4, kind: output, shape index: {}]  }
   0x1   :  { %s690_s17 = smov 0  }
   0x2 LB: > { %s33_s18 = sadd.s32 1, %s653_s16  ;;  %p571_p0 = scmp.ge.s32.totalorder %s657_s17, 1  ;;  %s657_s17 = sphi %s690_s17, %s14_s17   ;;  %s653_s16 = sphi %s688_s16, %s739_s16   ;;  %s649_s15 = sphi %s686_s15, %s738_s15  }
   0x3   : > { %p35_p1 = scmp.ge.s32.totalorder %s33_s18, 2  ;;  %p231_p2 = scmp.lt.s32.totalorder %s657_s17, 3 }
   0x5   : > { %s741_s18 = smov (%p35_p1, %s33_s18), 0  ;;  %p232_p3 = pnand %p571_p0, %p231_p2 }
   0x6   : > { %v634_v0 = vld [vmem:[%s734_s1] sm:$0xff] (!%p232_p3)   ;;  %v337_v1 = vlaneseq (!%p232_p3)  ;;  %v659_v2 = vmov (!%p232_p3), 0.0   ;;  %p288_p4 = scmp.lt.s32.totalorder (!%p232_p3), %s649_s15, 1  ;;  %vm660_vm0 = vmmov (!%p232_p3), 0   ;;  %vm364_vm1 = vcmask (!%p232_p3), 130048  }
   0x7   : > { %235 = sbr.rel (%p232_p3) target bundleno = 248 (0xf8), region = 36  ;;  %602 = vmatprep.subr.bf16.mxu0 (!%p232_p3), %v659_v2  ;;  %604 = vmatprep.mubr.msk.bf16.mxu0 (!%p232_p3), %vm660_vm0, %v659_v2 }
   0x8   : > { %603 = vmatpush3.bf16.msra.mxu0 (!%p232_p3), %v634_v0  ;;  %v338_v3 = vshrl.u32 (!%p232_p3), %v337_v1, 7 }
   0xa   : > { %v339_v4 = vsub.s32 (!%p232_p3), 0, %v338_v3 }
   0xe   : > { %s743_s15 = smov (!%p288_p4, %s649_s15), 1 }
   0xf   : > { %s707_s21 = sshll.u32 %s743_s15, 3  ;;  %s303_s24 = scalar_lea.vmem %s735_s2, %s743_s15 }
  0x10   : > { %v333_v5 = vld [vmem:[%s303_s24] sm:$0x1]  ;;  %s295_s27 = scalar_lea.vmem %s733_s0, %s707_s21  ;;  %s315_s30 = scalar_lea.vmem %s736_s3, %s707_s21 }
  0x11   : > { %v335_v6 = vpack.i.b16 %v333_v5, %v333_v5  ;;  %v331_v8 = vld [vmem:[%s295_s27] sm:$0xf]  ;;  %v332_v9 = vld [vmem:[%s295_s27 + $0x4] sm:$0xf]  ;;  %s328_s7 = scalar_lea.vmem %s737_s4, %s707_s21 }
  0x12   : > { %v592_v14 = vld [vmem:[%s315_s30] sm:$0xff]  }
  0x13   : > { %v340_v7 = vrot.slane %v335_v6, %v339_v4  ;;  %v593_v15 = vunpack.c.l.bf16 %v592_v14  ;;  %v594_v16 = vunpack.c.h.bf16 %v592_v14 }
  0x15   : > { %v578_v10 = vcombine.low %v340_v7, %v340_v7 }
  0x17   : > { %v345_v11 = vmul.bf16 %v578_v10, %v331_v8  ;;  %v346_v12 = vmul.bf16 %v578_v10, %v332_v9 }
  0x19   : > { %v579_v13 = vcombine.low %v345_v11, %v346_v12 }
  0x1b   : > { %605 = vmatmul.mubr.msk.bf16.vlgmr.msra.gmra.mrb[0].mxu0 %vm364_vm1, %v579_v13 }
  0xee   : > { %v402_v17 = vpop.f32.mrb[0].mxu0 }
  0xef   : > { %v403_v18 = vadd.f32 %v593_v15, %v402_v17  ;;  %v606_v19 = vpop.f32.mrb[1].mxu0 }
  0xf0   : > { %v405_v20 = vpop.f32.mrb[2].mxu0 }
  0xf1   : > { %v406_v21 = vadd.f32 %v594_v16, %v405_v20  ;;  %v607_v22 = vpop.f32.mrb[3].mxu0  ;;  %v409_v23 = vmax.f32 %v403_v18, 0.0 }
  0xf3   : > { %v410_v24 = vmax.f32 %v406_v21, 0.0 }
  0xf5   : > { %v598_v25 = vpack.c.bf16 %v410_v24, %v409_v23 }
  0xf7   : > { %599 = vst [vmem:[%s328_s7] sm:$0xff] %v598_v25  }
  0xf8 PF: > { %s14_s17 = sadd.s32 1, %s657_s17   ;;  %s738_s15 = smov %s653_s16 }
  0xf9   : > { %p11_p5 = scmp.ge.s32.totalorder %s14_s17, 4   ;;  %s739_s16 = smov %s741_s18 }
  0xfb   :  { %13 = sbr.rel (!%p11_p5) target bundleno = 2 (0x2), region = 75 }

// kernel: _lambda_.24
= control target key start
LH: loop header
LB: loop body
LE: loop exit
PB: predicated region body
PF: predicated region fallthrough
CT: control target
= control target key end

     0   :  { %v337_v1 = vmov 0.0   ;;  %vm338_vm0 = vmmov 0   ;;  %vm168_vm1 = vcmask 261120   ;;  %s417_s1 = inlined_call_operand.vmem [shape: bf16[288,128], index: 1, kind: input, shape index: {}]   ;;  %s418_s0 = inlined_call_operand.vmem [shape: bf16[1,8,288], index: 0, kind: input, shape index: {}]   ;;  %s419_s2 = inlined_call_operand.vmem [shape: bf16[1,8,128], index: 2, kind: output, shape index: {}]  }
   0x1   :  { %v316_v0 = vld [vmem:[%s417_s1 + $0x40] sm:$0xff]   ;;  %306 = vmatprep.subr.bf16.mxu1 %v337_v1  ;;  %310 = vmatprep.mubr.msk.bf16.mxu1 %vm338_vm0, %v337_v1  ;;  %v318_v3 = vld [vmem:[%s417_s1 + $0x48] sm:$0xff]   ;;  %v320_v5 = vld [vmem:[%s417_s1 + $0x50] sm:$0xff]  }
   0x2   :  { %v317_v2 = vld [vmem:[%s417_s1] sm:$0xff]   ;;  %281 = vmatprep.subr.bf16.mxu0 %v316_v0  ;;  %v319_v4 = vld [vmem:[%s417_s1 + $0x8] sm:$0xff]   ;;  %v321_v6 = vld [vmem:[%s417_s1 + $0x10] sm:$0xff]  }
   0x3   :  { %282 = vmatpush3.bf16.msra.mxu0 %v317_v2  ;;  %v322_v7 = vld [vmem:[%s417_s1 + $0x58] sm:$0xff]   ;;  %v324_v9 = vld [vmem:[%s417_s1 + $0x60] sm:$0xff]   ;;  %v326_v12 = vld [vmem:[%s417_s1 + $0x68] sm:$0xff]  }
   0x4   :  { %283 = vmatprep.subr.bf16.mxu0 %v318_v3  ;;  %v323_v8 = vld [vmem:[%s417_s1 + $0x18] sm:$0xff]   ;;  %v330_v10 = vld [vmem:[%s417_s1 + $0x80] sm:$0xff]   ;;  %v333_v13 = vld [vmem:[%s417_s1 + $0x88] sm:$0xff]  }
   0x5   :  { %v325_v11 = vld [vmem:[%s417_s1 + $0x20] sm:$0xff]   ;;  %307 = vmatpush3.bf16.msra.mxu1 %v330_v10  ;;  %v327_v15 = vld [vmem:[%s417_s1 + $0x28] sm:$0xff]   ;;  %v328_v18 = vld [vmem:[%s417_s1 + $0x70] sm:$0xff]  }
   0x6   :  { %308 = vmatprep.subr.bf16.mxu1 %v337_v1  ;;  %v12_v14 = vld [vmem:[%s418_s0] sm:$0xff]  ;;  %v336_v17 = vld [vmem:[%s418_s0 + $0x8] ss:$0 sps:$4 sm:$0xff]   ;;  %v329_v19 = vld [vmem:[%s417_s1 + $0x30] sm:$0xff]  }
   0x7   :  { %284 = vmatpush3.bf16.msra.mxu0 %v319_v4  ;;  %v260_v16 = vcombine.high %v12_v14, %v12_v14  ;;  %v331_v20 = vld [vmem:[%s417_s1 + $0x78] sm:$0xff]   ;;  %v259_v22 = vcombine.low %v12_v14, %v12_v14 }
   0x8   :  { %285 = vmatprep.subr.bf16.mxu0 %v320_v5  ;;  %v332_v21 = vld [vmem:[%s417_s1 + $0x38] sm:$0xff]  }
   0x9   :  { %309 = vmatpush3.bf16.msra.mxu1 %v333_v13  ;;  %204 = vmatprep.mubr.bf16.mxu0 %v260_v16 }
   0xb   :  { %286 = vmatpush3.bf16.msra.mxu0 %v321_v6 }
   0xc   :  { %287 = vmatprep.subr.bf16.mxu0 %v322_v7  ;;  %311 = vmatmul.mubr.msk.bf16.vlgmr.msra.gmra.mrb[0].mxu1 %vm168_vm1, %v336_v17 }
   0xf   :  { %288 = vmatpush3.bf16.msra.mxu0 %v323_v8 }
  0x10   :  { %289 = vmatprep.subr.bf16.mxu0 %v324_v9 }
  0x13   :  { %290 = vmatpush3.bf16.msra.mxu0 %v325_v11 }
  0x14   :  { %291 = vmatprep.subr.bf16.mxu0 %v326_v12 }
  0x17   :  { %292 = vmatpush3.bf16.msra.mxu0 %v327_v15 }
  0x18   :  { %293 = vmatprep.subr.bf16.mxu0 %v328_v18 }
  0x1b   :  { %294 = vmatpush3.bf16.msra.mxu0 %v329_v19 }
  0x1c   :  { %295 = vmatprep.subr.bf16.mxu0 %v331_v20 }
  0x1f   :  { %296 = vmatpush3.bf16.msra.mxu0 %v332_v21 }
  0x22   :  { %205 = vmatmul.mubr.bf16.vlgmr.msra.gmra.mrb[0].mxu0 %v259_v22 }
  0xdf   :  { %v246_v23 = vpop.f32.mrb[0].mxu1 }
  0xe0   :  { %v312_v24 = vpop.f32.mrb[1].mxu1 }
  0xe1   :  { %v249_v25 = vpop.f32.mrb[2].mxu1 }
  0xe2   :  { %v313_v26 = vpop.f32.mrb[3].mxu1 }
  0xf5   :  { %v297_v27 = vpop.f32.mrb[0].mxu0 }
  0xf6   :  { %v298_v28 = vpop.f32.mrb[1].mxu0 }
  0xf7   :  { %v299_v29 = vadd.f32 %v298_v28, %v297_v27  ;;  %v300_v30 = vpop.f32.mrb[2].mxu0 }
  0xf8   :  { %v301_v31 = vpop.f32.mrb[3].mxu0 }
  0xf9   :  { %v247_v32 = vadd.f32 %v299_v29, %v246_v23 }
  0xfb   :  { %v252_v33 = vmax.f32 %v247_v32, 0.0 }
  0xfd   :  { %v253_v34 = vpack.c.bf16 %v252_v33, %v252_v33 }
  0xff   :  { %254 = vst [vmem:[%s419_s2] sm:$0xf] %v253_v34 }

// kernel: _lambda_.27
= control target key start
LH: loop header
LB: loop body
LE: loop exit
PB: predicated region body
PF: predicated region fallthrough
CT: control target
= control target key end

     0   :  { %s619_s15 = smov 0   ;;  %s621_s16 = smov 0   ;;  %s664_s0 = inlined_call_operand.vmem [shape: bf16[2,8,32], index: 0, kind: input, shape index: {}]   ;;  %s665_s1 = inlined_call_operand.vmem [shape: bf16[32,128], index: 1, kind: input, shape index: {}]   ;;  %s666_s2 = inlined_call_operand.vmem [shape: bf16[2,1,32], index: 2, kind: input, shape index: {}]   ;;  %s667_s3 = inlined_call_operand.vmem [shape: bf16[2,8,128], index: 3, kind: input, shape index: {}]   ;;  %s668_s4 = inlined_call_operand.vmem [shape: bf16[2,8,128], index: 4, kind: output, shape index: {}]  }
   0x1   :  { %s623_s17 = smov 0  }
   0x2 LB: > { %s33_s18 = sadd.s32 1, %s586_s16  ;;  %p520_p0 = scmp.ge.s32.totalorder %s590_s17, 1  ;;  %s590_s17 = sphi %s623_s17, %s14_s17   ;;  %s586_s16 = sphi %s621_s16, %s670_s16   ;;  %s582_s15 = sphi %s619_s15, %s669_s15  }
   0x3   : > { %p35_p1 = scmp.ge.s32.totalorder %s33_s18, 2  ;;  %p225_p2 = scmp.lt.s32.totalorder %s590_s17, 3 }
   0x5   : > { %s672_s18 = smov (%p35_p1, %s33_s18), 0  ;;  %p226_p3 = pnand %p520_p0, %p225_p2 }
   0x6   : > { %v566_v0 = vld [vmem:[%s665_s1] sm:$0xff] (!%p226_p3)   ;;  %v315_v1 = vlaneseq (!%p226_p3)  ;;  %v592_v2 = vmov (!%p226_p3), 0.0   ;;  %v567_v3 = vld [vmem:[%s665_s1 + $0x8] sm:$0xff] (!%p226_p3)   ;;  %vm593_vm0 = vmmov (!%p226_p3), 0   ;;  %p275_p4 = scmp.lt.s32.totalorder (!%p226_p3), %s582_s15, 1  ;;  %vm338_vm1 = vcmask (!%p226_p3), 261120  }
   0x7   : > { %229 = sbr.rel (%p226_p3) target bundleno = 242 (0xf2), region = 36  ;;  %532 = vmatprep.subr.bf16.mxu0 (!%p226_p3), %v592_v2  ;;  %536 = vmatprep.mubr.msk.bf16.mxu0 (!%p226_p3), %vm593_vm0, %v592_v2 }
   0x8   : > { %533 = vmatpush3.bf16.msra.mxu0 (!%p226_p3), %v566_v0  ;;  %v316_v4 = vshrl.u32 (!%p226_p3), %v315_v1, 7 }
   0x9   : > { %534 = vmatprep.subr.bf16.mxu0 (!%p226_p3), %v592_v2 }
   0xa   : > { %v317_v5 = vsub.s32 (!%p226_p3), 0, %v316_v4 }
   0xc   : > { %535 = vmatpush3.bf16.msra.mxu0 (!%p226_p3), %v567_v3 }
   0xe   : > { %s674_s15 = smov (!%p275_p4, %s582_s15), 1 }
   0xf   : > { %s521_s23 = sshll.u32 %s674_s15, 2  ;;  %s288_s26 = scalar_lea.vmem %s666_s2, %s674_s15 }
  0x10   : > { %s281_s29 = scalar_lea.vmem %s664_s0, %s521_s23  ;;  %v311_v6 = vld [vmem:[%s288_s26] sm:$0x1]  ;;  %s298_s6 = scalar_lea.vmem %s667_s3, %s521_s23 }
  0x11   : > { %v313_v7 = vpack.i.b16 %v311_v6, %v311_v6  ;;  %v310_v8 = vld [vmem:[%s281_s29] sm:$0xf]  ;;  %s308_s9 = scalar_lea.vmem %s668_s4, %s521_s23 }
  0x12   : > { %v324_v11 = vld [vmem:[%s298_s6] sm:$0xf] }
  0x13   : > { %v318_v9 = vrot.slane %v313_v7, %v317_v5  ;;  %v325_v12 = vunpack.c.l.bf16 %v324_v11 }
  0x15   : > { %v319_v10 = vmul.bf16 %v318_v9, %v310_v8 }
  0x17   : > { %537 = vmatmul.mubr.msk.bf16.vlgmr.msra.gmra.mrb[0].mxu0 %vm338_vm1, %v319_v10 }
  0xea   : > { %v376_v13 = vpop.f32.mrb[0].mxu0 }
  0xeb   : > { %v377_v14 = vadd.f32 %v376_v13, %v325_v12  ;;  %v538_v15 = vpop.f32.mrb[1].mxu0 }
  0xec   : > { %v379_v16 = vpop.f32.mrb[2].mxu0 }
  0xed   : > { %v382_v17 = vmax.f32 %v377_v14, 0.0  ;;  %v539_v18 = vpop.f32.mrb[3].mxu0 }
  0xef   : > { %v383_v19 = vpack.c.bf16 %v382_v17, %v382_v17 }
  0xf1   : > { %384 = vst [vmem:[%s308_s9] sm:$0xf] %v383_v19 }
  0xf2 PF: > { %s14_s17 = sadd.s32 1, %s590_s17   ;;  %s669_s15 = smov %s586_s16 }
  0xf3   : > { %p11_p5 = scmp.ge.s32.totalorder %s14_s17, 4   ;;  %s670_s16 = smov %s672_s18 }
  0xf5   :  { %13 = sbr.rel (!%p11_p5) target bundleno = 2 (0x2), region = 75 }

// kernel: _lambda_.25
= control target key start
LH: loop header
LB: loop body
LE: loop exit
PB: predicated region body
PF: predicated region fallthrough
CT: control target
= control target key end

     0   :  { %s283_s6 = smov 0   ;;  %s285_s7 = smov 0   ;;  %s316_s0 = inlined_call_operand.vmem [shape: bf16[2,4,128], index: 0, kind: input, shape index: {}]   ;;  %s317_s1 = inlined_call_operand.vmem [shape: f32[2,1,128], index: 1, kind: output, shape index: {}]  }
   0x1   :  { %s287_s8 = smov 0  }
   0x2 LB: > { %s23_s9 = sadd.s32 1, %s266_s7  ;;  %p219_p0 = scmp.ge.s32.totalorder %s270_s8, 1  ;;  %s270_s8 = sphi %s287_s8, %s11_s8   ;;  %s266_s7 = sphi %s285_s7, %s319_s7   ;;  %s262_s6 = sphi %s283_s6, %s318_s6  }
   0x3   : > { %p25_p1 = scmp.ge.s32.totalorder %s23_s9, 2  ;;  %p103_p2 = scmp.lt.s32.totalorder %s270_s8, 3 }
   0x5   : > { %s321_s9 = smov (%p25_p1, %s23_s9), 0  ;;  %p104_p3 = pnand %p219_p0, %p103_p2 }
   0x6   : > { %p123_p4 = scmp.lt.s32.totalorder (!%p104_p3), %s262_s6, 1  ;;  %v272_v0 = vmov (!%p104_p3), 0.0   ;;  %vm141_vm0 = vcmask (!%p104_p3), 1043456  }
   0x7   : > { %107 = sbr.rel (%p104_p3) target bundleno = 46 (0x2e), region = 24 }
   0xe   : > { %s323_s6 = smov (!%p123_p4, %s262_s6), 1 }
   0xf   : > { %s220_s10 = sshll.u32 %s323_s6, 1  ;;  %s132_s13 = scalar_lea.vmem %s317_s1, %s323_s6 }
  0x10   : > { %s129_s16 = scalar_lea.vmem %s316_s0, %s220_s10  ;;  %137 = vst [vmem:[%s132_s13] sm:$0x1] %v272_v0 }
  0x11   : > { %v139_v1 = vld [vmem:[%s129_s16] sm:$0x3] }
  0x12   : > { %v140_v2 = vunpack.c.l.bf16 %v139_v1 }
  0x14   : > { %v142_v3 = vsel %vm141_vm0, %v140_v2, 0.0 }
  0x15   : > { %v143_v4 = vrot.slane %v142_v3, 4 }
  0x17   : > { %v144_v5 = vadd.f32 %v143_v4, %v142_v3  ;;  %v138_v9 = vld [vmem:[%s132_s13] sm:$0x1] }
  0x19   : > { %v145_v6 = vrot.slane %v144_v5, 2 }
  0x1b   : > { %v146_v7 = vadd.f32 %v145_v6, %v144_v5 }
  0x1d   : > { %v147_v8 = vrot.slane %v146_v7, 1 }
  0x1f   : > { %v148_v10 = vadd.f32 %v147_v8, %v146_v7 }
  0x21   : > { %v149_v11 = vadd.f32 %v148_v10, %v138_v9 }
  0x23   : > { %150 = vst [vmem:[%s132_s13] sm:$0x1] %v149_v11 }
  0x2a   : > { %v154_v12 = vld [vmem:[%s132_s13] sm:$0x1] }
  0x2b   : > { %v155_v13 = vmul.f32 0.25, %v154_v12 }
  0x2d   : > { %156 = vst [vmem:[%s132_s13] sm:$0x1] %v155_v13 }
  0x2e PF: > { %s11_s8 = sadd.s32 1, %s270_s8   ;;  %s318_s6 = smov %s266_s7 }
  0x2f   : > { %p8_p5 = scmp.ge.s32.totalorder %s11_s8, 4   ;;  %s319_s7 = smov %s321_s9 }
  0x31   :  { %10 = sbr.rel (!%p8_p5) target bundleno = 2 (0x2), region = 62 }

// kernel: _lambda_.22
= control target key start
LH: loop header
LB: loop body
LE: loop exit
PB: predicated region body
PF: predicated region fallthrough
CT: control target
= control target key end

     0   :  { %v84_v0 = vmov 0.0   ;;  %vm85_vm0 = vmmov 0   ;;  %vm21_vm1 = vcmask 130048   ;;  %s110_s1 = inlined_call_operand.vmem [shape: bf16[16,128], index: 1, kind: input, shape index: {}]   ;;  %s111_s0 = inlined_call_operand.vmem [shape: bf16[1,8,16], index: 0, kind: input, shape index: {}]   ;;  %s112_s2 = inlined_call_operand.vmem [shape: bf16[1,8,128], index: 2, kind: output, shape index: {}]  }
   0x1   :  { %75 = vmatprep.subr.bf16.mxu0 %v84_v0  ;;  %v83_v1 = vld [vmem:[%s110_s1] sm:$0xff]   ;;  %77 = vmatprep.mubr.msk.bf16.mxu0 %vm85_vm0, %v84_v0 }
   0x2   :  { %76 = vmatpush3.bf16.msra.mxu0 %v83_v1  ;;  %v12_v2 = vld [vmem:[%s111_s0] sm:$0xf] }
   0x5   :  { %78 = vmatmul.mubr.msk.bf16.vlgmr.msra.gmra.mrb[0].mxu0 %vm21_vm1, %v12_v2 }
  0xd8   :  { %v59_v3 = vpop.f32.mrb[0].mxu0 }
  0xd9   :  { %v65_v4 = vpack.c.bf16 %v59_v3, %v59_v3  ;;  %v79_v5 = vpop.f32.mrb[1].mxu0 }
  0xda   :  { %v62_v6 = vpop.f32.mrb[2].mxu0 }
  0xdb   :  { %66 = vst [vmem:[%s112_s2] sm:$0xf] %v65_v4  ;;  %v80_v7 = vpop.f32.mrb[3].mxu0 }

// kernel: _lambda_.29
= control target key start
LH: loop header
LB: loop body
LE: loop exit
PB: predicated region body
PF: predicated region fallthrough
CT: control target
= control target key end

     0   :  { %v107_v0 = vmov 0.0   ;;  %vm108_vm0 = vmmov 0   ;;  %vm39_vm1 = vcmask 261120   ;;  %s144_s1 = inlined_call_operand.vmem [shape: bf16[32,128], index: 1, kind: input, shape index: {}]   ;;  %s145_s0 = inlined_call_operand.vmem [shape: bf16[1,8,32], index: 0, kind: input, shape index: {}]   ;;  %s146_s2 = inlined_call_operand.vmem [shape: f32[1,1,128], index: 2, kind: input, shape index: {}]   ;;  %s147_s3 = inlined_call_operand.vmem [shape: f32[1,8,128], index: 3, kind: output, shape index: {}]  }
   0x1   :  { %95 = vmatprep.subr.bf16.mxu0 %v107_v0  ;;  %v105_v1 = vld [vmem:[%s144_s1] sm:$0xff]   ;;  %99 = vmatprep.mubr.msk.bf16.mxu0 %vm108_vm0, %v107_v0  ;;  %v106_v2 = vld [vmem:[%s144_s1 + $0x8] sm:$0xff]  }
   0x2   :  { %96 = vmatpush3.bf16.msra.mxu0 %v105_v1  ;;  %v15_v3 = vld [vmem:[%s145_s0] sm:$0xf] }
   0x3   :  { %97 = vmatprep.subr.bf16.mxu0 %v107_v0  ;;  %v88_v4 = vld [vmem:[%s146_s2] ss:$0 sm:$0xff] }
   0x6   :  { %98 = vmatpush3.bf16.msra.mxu0 %v106_v2 }
   0x9   :  { %100 = vmatmul.mubr.msk.bf16.vlgmr.msra.gmra.mrb[0].mxu0 %vm39_vm1, %v15_v3 }
  0xdc   :  { %v77_v5 = vpop.f32.mrb[0].mxu0 }
  0xdd   :  { %v78_v6 = vadd.f32 %v88_v4, %v77_v5  ;;  %v101_v7 = vpop.f32.mrb[1].mxu0 }
  0xde   :  { %v80_v8 = vpop.f32.mrb[2].mxu0 }
  0xdf   :  { %83 = vst [vmem:[%s147_s3] sm:$0xff] %v78_v6  ;;  %v102_v9 = vpop.f32.mrb[3].mxu0 }

</bundles_post_ra>
